<compile_context>
chip_gen: v6e
topology: v6e:2x2x1
jax: 0.10.0
libtpu: 0.0.40
codegen_flags: <defaults>
</compile_context>

<pallas_src>
import jax
import jax.numpy as jnp
from jax import lax
from jax.experimental import pallas as pl
from jax.experimental.pallas import tpu as pltpu


# --------------------------- fused Down kernel -------------------------------
def _down_fused_kernel(x_ref, w1_ref, b1_ref, w2_ref, b2_ref, o_ref,
                       pad1_ref, pad2_ref):
    """Fused MaxPool2d(2) + (conv3x3 + BN + ReLU) x 2 for one row strip.

    x_ref  : (1, 1, S+4, Wp, 4*Cin)  pooled-resolution strip with a 2-row halo
                                     on each side; 2x2 pool window folded into
                                     the lane (channel) dimension.
    w1_ref : (9, Cin,  Cmid)  conv1 weights, tap-major, BN1 scale folded in
    b1_ref : (1, Cmid)        folded BN1 bias (f32)
    w2_ref : (9, Cmid, Cout)  conv2 weights, tap-major, BN2 scale folded in
    b2_ref : (1, Cout)        folded BN2 bias (f32)
    o_ref  : (1, S, Wp, Cout)
    pad1   : VMEM (S+4, Wp+2, Cin)   W-zero-padded pooled activation
    pad2   : VMEM (S+2, Wp+2, Cmid)  W-zero-padded conv1 activation
    """
    s_idx = pl.program_id(1)
    _, _, rows, wp, c4 = x_ref.shape
    cin = c4 // 4
    cmid = w1_ref.shape[-1]
    cout = o_ref.shape[-1]
    strip = rows - 4            # S: conv2 output rows produced this step
    r1 = strip + 2              # conv1 rows computed (1-row halo each side)

    # ---- MaxPool2d(2): the four window positions live in the lane dim.
    xt = x_ref[0, 0]                                        # (S+4, Wp, 4*Cin)
    pooled = jnp.maximum(
        jnp.maximum(xt[..., 0 * cin:1 * cin], xt[..., 1 * cin:2 * cin]),
        jnp.maximum(xt[..., 2 * cin:3 * cin], xt[..., 3 * cin:4 * cin]))

    # ---- conv1 input: W-zero-padded strip (H halo already in the data).
    #      Only the two border columns are zeroed, never the full buffer.
    pad1_ref[:, 1:wp + 1, :] = pooled
    pad1_ref[:, 0:1, :] = jnp.zeros((rows, 1, cin), pad1_ref.dtype)
    pad1_ref[:, wp + 1:wp + 2, :] = jnp.zeros((rows, 1, cin), pad1_ref.dtype)

    # ---- conv1: 9 accumulated MXU matmuls straight off the padded scratch
    #      (no materialized im2col). BN scale already folded into w1.
    acc1 = jnp.zeros((r1 * wp, cmid), jnp.float32)
    for t in range(9):                                      # static unroll
        dy, dx = t // 3, t % 3
        a = pad1_ref[dy:dy + r1, dx:dx + wp, :].reshape(r1 * wp, cin)
        acc1 = acc1 + jnp.dot(a, w1_ref[t],
                              preferred_element_type=jnp.float32)
    y1 = jnp.maximum(acc1 + b1_ref[...], 0.0)               # (r1*Wp, Cmid)

    # ---- conv2 input: conv1 activation, W-zero-padded, kept in input dtype.
    pad2_ref[:, 1:wp + 1, :] = y1.reshape(r1, wp, cmid).astype(pad2_ref.dtype)
    pad2_ref[:, 0:1, :] = jnp.zeros((r1, 1, cmid), pad2_ref.dtype)
    pad2_ref[:, wp + 1:wp + 2, :] = jnp.zeros((r1, 1, cmid), pad2_ref.dtype)

    # At the image top/bottom the conv1 halo row does not exist: conv2's zero
    # padding requires that row to be zero (not the value computed from the
    # zero-padded pooled input, which is nonzero after BN bias + ReLU).
    @pl.when(s_idx == 0)
    def _():
        pad2_ref[0:1, :, :] = jnp.zeros((1, wp + 2, cmid), pad2_ref.dtype)

    @pl.when(s_idx == pl.num_programs(1) - 1)
    def _():
        pad2_ref[r1 - 1:r1, :, :] = jnp.zeros((1, wp + 2, cmid),
                                              pad2_ref.dtype)

    # ---- conv2: again 9 accumulated matmuls; bias + ReLU epilogue.
    acc2 = jnp.zeros((strip * wp, cout), jnp.float32)
    for t in range(9):
        dy, dx = t // 3, t % 3
        a = pad2_ref[dy:dy + strip, dx:dx + wp, :].reshape(strip * wp, cmid)
        acc2 = acc2 + jnp.dot(a, w2_ref[t],
                              preferred_element_type=jnp.float32)
    y2 = jnp.maximum(acc2 + b2_ref[...], 0.0)

    o_ref[0] = y2.reshape(strip, wp, cout).astype(o_ref.dtype)


# ------------------------------ parameters -----------------------------------
def fold_bn(gamma, beta, mean, var, eps=1e-5):
    scale = gamma / jnp.sqrt(var + eps)
    bias = beta - mean * scale
    return scale, bias


def init_down_params(key, in_channels, out_channels):
    mid = out_channels  # DoubleConv: mid_channels defaults to out_channels
    ks = jax.random.split(key, 10)
    return {
        # conv weights in PyTorch OIHW layout
        "w1": 0.1 * jax.random.normal(ks[0], (mid, in_channels, 3, 3), jnp.float32),
        "g1": 1.0 + 0.1 * jax.random.normal(ks[1], (mid,), jnp.float32),
        "b1": 0.1 * jax.random.normal(ks[2], (mid,), jnp.float32),
        "m1": 0.1 * jax.random.normal(ks[3], (mid,), jnp.float32),
        "v1": jax.random.uniform(ks[4], (mid,), jnp.float32, 0.5, 1.5),
        "w2": 0.1 * jax.random.normal(ks[5], (out_channels, mid, 3, 3), jnp.float32),
        "g2": 1.0 + 0.1 * jax.random.normal(ks[6], (out_channels,), jnp.float32),
        "b2": 0.1 * jax.random.normal(ks[7], (out_channels,), jnp.float32),
        "m2": 0.1 * jax.random.normal(ks[8], (out_channels,), jnp.float32),
        "v2": jax.random.uniform(ks[9], (out_channels,), jnp.float32, 0.5, 1.5),
    }


def _pick_block_rows(hp, target=32):
    """Largest divisor of hp that is <= target (strip rows per grid step)."""
    best = 1
    for s in range(1, hp + 1):
        if hp % s == 0 and s <= target:
            best = s
    return best


# ------------------------------ Down forward ---------------------------------
def down_forward(x_nchw, params, *, block_rows=None):
    n, cin, h, w = x_nchw.shape
    # PyTorch MaxPool2d(2) floor-drops an odd trailing row/col.
    h2, w2 = (h // 2) * 2, (w // 2) * 2
    if (h2, w2) != (h, w):
        x_nchw = x_nchw[:, :, :h2, :w2]
    hp, wp = h2 // 2, w2 // 2
    cmid = params["w1"].shape[0]
    cout = params["w2"].shape[0]
    dt = x_nchw.dtype

    strip = block_rows if block_rows is not None else _pick_block_rows(hp)
    assert hp % strip == 0, (hp, strip)
    n_strips = hp // strip

    # Single boundary layout transform: fold the 2x2 pool window into lanes.
    x6 = x_nchw.reshape(n, cin, hp, 2, wp, 2)
    x6 = jnp.transpose(x6, (0, 2, 4, 3, 5, 1))          # (n, hp, wp, 2, 2, cin)
    x_folded = x6.reshape(n, hp, wp, 4 * cin)

    # 2-row halo (zeros at the image boundary) + overlapped row strips so the
    # BlockSpec pipeline can stream strips with plain block indexing.
    x_halo = jnp.pad(x_folded, ((0, 0), (2, 2), (0, 0), (0, 0)))
    rows = jnp.arange(n_strips)[:, None] * strip + jnp.arange(strip + 4)[None, :]
    x_strips = x_halo[:, rows]              # (n, n_strips, strip+4, wp, 4*cin)

    # Weight / BN prep outside the kernel hot path.
    # OIHW -> (kh, kw, in, out) -> (9, Cin, Cout); BN scale folded into columns.
    s1, b1 = fold_bn(params["g1"], params["b1"], params["m1"], params["v1"])
    s2, b2 = fold_bn(params["g2"], params["b2"], params["m2"], params["v2"])
    w1 = jnp.transpose(params["w1"], (2, 3, 1, 0)).reshape(9, cin, cmid)
    w2 = jnp.transpose(params["w2"], (2, 3, 1, 0)).reshape(9, cmid, cout)
    w1 = (w1 * s1[None, None, :]).astype(dt)
    w2 = (w2 * s2[None, None, :]).astype(dt)
    b1 = b1.reshape(1, cmid).astype(jnp.float32)
    b2 = b2.reshape(1, cout).astype(jnp.float32)

    # Explicit scoped-VMEM budget derived from the chosen tile sizes.
    itm = jnp.dtype(dt).itemsize
    est = (2 * (strip + 4) * wp * 4 * cin * itm            # input strip (2-buf)
           + 2 * strip * wp * cout * itm                   # output strip (2-buf)
           + 2 * 9 * (cin * cmid + cmid * cout) * itm      # weights (2-buf)
           + (strip + 4) * (wp + 2) * cin * itm            # pad1 scratch
           + (strip + 2) * (wp + 2) * cmid * itm           # pad2 scratch
           + 4 * ((strip + 2) * wp * cmid + strip * wp * cout))  # f32 accums
    vmem_limit = int(min(max(2 * est + (4 << 20), 16 << 20), 64 << 20))

    # TODO(synk): single-buffer the constant-index weight/bias inputs with
    # pipeline_mode=pl.Buffered(1); at large Cmid/Cout this reclaims the
    # duplicated w2 buffer and allows bigger strips.
    out_nhwc = pl.pallas_call(
        _down_fused_kernel,
        out_shape=jax.ShapeDtypeStruct((n, hp, wp, cout), dt),
        grid=(n, n_strips),
        in_specs=[
            pl.BlockSpec((1, 1, strip + 4, wp, 4 * cin),
                         lambda b, s: (b, s, 0, 0, 0)),
            pl.BlockSpec((9, cin, cmid), lambda b, s: (0, 0, 0)),
            pl.BlockSpec((1, cmid), lambda b, s: (0, 0)),
            pl.BlockSpec((9, cmid, cout), lambda b, s: (0, 0, 0)),
            pl.BlockSpec((1, cout), lambda b, s: (0, 0)),
        ],
        out_specs=pl.BlockSpec((1, strip, wp, cout), lambda b, s: (b, s, 0, 0)),
        scratch_shapes=[
            pltpu.VMEM((strip + 4, wp + 2, cin), dt),
            pltpu.VMEM((strip + 2, wp + 2, cmid), dt),
        ],
        compiler_params=pltpu.CompilerParams(
            dimension_semantics=("parallel", "parallel"),
            vmem_limit_bytes=vmem_limit),
    )(x_strips, w1, b1, w2, b2)

    # TODO(synk): keep activations channels-last (NHWC) between UNet blocks to
    # avoid this boundary transpose (a full extra HBM pass done by XLA).
    return jnp.transpose(out_nhwc, (0, 3, 1, 2))            # NHWC -> NCHW


# ------------------------- pure-JAX reference (NCHW) --------------------------
def down_reference(x, p):
    n, c, h, w = x.shape
    x = x.reshape(n, c, h // 2, 2, w // 2, 2).max(axis=(3, 5))

    def conv_bn_relu_ref(x, wgt, g, b, m, v):
        y = lax.conv_general_dilated(
            x, wgt, window_strides=(1, 1), padding=((1, 1), (1, 1)),
            dimension_numbers=("NCHW", "OIHW", "NCHW"))
        s = g / jnp.sqrt(v + 1e-5)
        y = y * s.reshape(1, -1, 1, 1) + (b - m * s).reshape(1, -1, 1, 1)
        return jnp.maximum(y, 0.0)

    x = conv_bn_relu_ref(x, p["w1"], p["g1"], p["b1"], p["m1"], p["v1"])
    x = conv_bn_relu_ref(x, p["w2"], p["g2"], p["b2"], p["m2"], p["v2"])
    return x


if __name__ == "__main__":
    key = jax.random.PRNGKey(0)
    k_x, k_p = jax.random.split(key)

    in_channels, out_channels = 4, 8
    x = jax.random.normal(k_x, (2, in_channels, 16, 16), jnp.float32)  # NCHW
    params = init_down_params(k_p, in_channels, out_channels)

    # block_rows=4 -> 2 row strips per image, exercising the halo logic.
    fwd = jax.jit(lambda xx, pp: down_forward(xx, pp, block_rows=4))
    out = jax.block_until_ready(fwd(x, params))

    ref = down_reference(x, params)
    assert out.shape == (2, out_channels, 8, 8), out.shape
    assert jnp.allclose(out, ref, rtol=1e-4, atol=1e-4), \
        float(jnp.max(jnp.abs(out - ref)))

    print("KERNEL_OK")
</pallas_src>

<mosaic_0001>
module attributes {stable_mosaic.version = 11 : i64} {
  func.func @_down_fused_kernel(%arg0: i32, %arg1: i32, %arg2: memref<1x1x8x8x16xf32, #tpu.memory_space<vmem>>, %arg3: memref<9x4x8xf32, #tpu.memory_space<vmem>>, %arg4: memref<1x8xf32, #tpu.memory_space<vmem>>, %arg5: memref<9x8x8xf32, #tpu.memory_space<vmem>>, %arg6: memref<1x8xf32, #tpu.memory_space<vmem>>, %arg7: memref<1x4x8x8xf32, #tpu.memory_space<vmem>>, %arg8: memref<8x10x4xf32, #tpu.memory_space<vmem>>, %arg9: memref<6x10x8xf32, #tpu.memory_space<vmem>>) attributes {dimension_semantics = [#tpu.dimension_semantics<parallel>, #tpu.dimension_semantics<parallel>], iteration_bounds = array<i64: 2, 2>, scalar_prefetch = 0 : i64, scratch_operands = 2 : i64, tpu.core_type = #tpu.core_type<tc>, window_params = [{transform_indices = @transform_0, window_bounds = array<i64: 1, 1, 8, 8, 16>}, {pipeline_mode = #tpu.pipeline_mode<synchronous>, transform_indices = @transform_1, window_bounds = array<i64: 9, 4, 8>}, {pipeline_mode = #tpu.pipeline_mode<synchronous>, transform_indices = @transform_2, window_bounds = array<i64: 1, 8>}, {pipeline_mode = #tpu.pipeline_mode<synchronous>, transform_indices = @transform_3, window_bounds = array<i64: 9, 8, 8>}, {pipeline_mode = #tpu.pipeline_mode<synchronous>, transform_indices = @transform_4, window_bounds = array<i64: 1, 8>}, {transform_indices = @transform_5, window_bounds = array<i64: 1, 4, 8, 8>}]} {
    %c0 = arith.constant 0 : index
    %c0_0 = arith.constant 0 : index
    %c0_1 = arith.constant 0 : index
    %c0_2 = arith.constant 0 : index
    %c0_3 = arith.constant 0 : index
    %0 = vector.load %arg2[%c0, %c0_0, %c0_1, %c0_2, %c0_3] : memref<1x1x8x8x16xf32, #tpu.memory_space<vmem>>, vector<1x1x8x8x16xf32>
    %1 = vector.shape_cast %0 : vector<1x1x8x8x16xf32> to vector<8x8x16xf32>
    %2 = vector.extract_strided_slice %1 {offsets = [0, 0, 0], sizes = [8, 8, 4], strides = [1, 1, 1]} : vector<8x8x16xf32> to vector<8x8x4xf32>
    %3 = vector.extract_strided_slice %1 {offsets = [0, 0, 4], sizes = [8, 8, 4], strides = [1, 1, 1]} : vector<8x8x16xf32> to vector<8x8x4xf32>
    %4 = arith.maximumf %2, %3 : vector<8x8x4xf32>
    %5 = vector.extract_strided_slice %1 {offsets = [0, 0, 8], sizes = [8, 8, 4], strides = [1, 1, 1]} : vector<8x8x16xf32> to vector<8x8x4xf32>
    %6 = vector.extract_strided_slice %1 {offsets = [0, 0, 12], sizes = [8, 8, 4], strides = [1, 1, 1]} : vector<8x8x16xf32> to vector<8x8x4xf32>
    %7 = arith.maximumf %5, %6 : vector<8x8x4xf32>
    %8 = arith.maximumf %4, %7 : vector<8x8x4xf32>
    %c0_4 = arith.constant 0 : index
    %c1 = arith.constant 1 : index
    %c0_5 = arith.constant 0 : index
    %9 = vector.load %arg8[%c0_4, %c1, %c0_5] : memref<8x10x4xf32, #tpu.memory_space<vmem>>, vector<8x8x4xf32>
    tpu.vector_store %arg8[%c0_4, %c1, %c0_5], %8 {strides = array<i32>} : memref<8x10x4xf32, #tpu.memory_space<vmem>>, vector<8x8x4xf32>,
    %cst = arith.constant 0.000000e+00 : f32
    %10 = vector.broadcast %cst : f32 to vector<8x1x4xf32>
    %c0_6 = arith.constant 0 : index
    %c0_7 = arith.constant 0 : index
    %c0_8 = arith.constant 0 : index
    %11 = vector.load %arg8[%c0_6, %c0_7, %c0_8] : memref<8x10x4xf32, #tpu.memory_space<vmem>>, vector<8x1x4xf32>
    tpu.vector_store %arg8[%c0_6, %c0_7, %c0_8], %10 {strides = array<i32>} : memref<8x10x4xf32, #tpu.memory_space<vmem>>, vector<8x1x4xf32>,
    %cst_9 = arith.constant 0.000000e+00 : f32
    %12 = vector.broadcast %cst_9 : f32 to vector<8x1x4xf32>
    %c0_10 = arith.constant 0 : index
    %c9 = arith.constant 9 : index
    %c0_11 = arith.constant 0 : index
    %13 = vector.load %arg8[%c0_10, %c9, %c0_11] : memref<8x10x4xf32, #tpu.memory_space<vmem>>, vector<8x1x4xf32>
    tpu.vector_store %arg8[%c0_10, %c9, %c0_11], %12 {strides = array<i32>} : memref<8x10x4xf32, #tpu.memory_space<vmem>>, vector<8x1x4xf32>,
    %cst_12 = arith.constant 0.000000e+00 : f32
    %14 = vector.broadcast %cst_12 : f32 to vector<48x8xf32>
    %c0_13 = arith.constant 0 : index
    %c0_14 = arith.constant 0 : index
    %c0_15 = arith.constant 0 : index
    %15 = vector.load %arg8[%c0_13, %c0_14, %c0_15] : memref<8x10x4xf32, #tpu.memory_space<vmem>>, vector<6x8x4xf32>
    %16 = vector.shape_cast %15 : vector<6x8x4xf32> to vector<48x4xf32>
    %c0_16 = arith.constant 0 : index
    %c0_17 = arith.constant 0 : index
    %c0_18 = arith.constant 0 : index
    %17 = vector.load %arg3[%c0_16, %c0_17, %c0_18] : memref<9x4x8xf32, #tpu.memory_space<vmem>>, vector<1x4x8xf32>
    %18 = vector.shape_cast %17 : vector<1x4x8xf32> to vector<4x8xf32>
    %cst_19 = arith.constant dense<0.000000e+00> : vector<48x8xf32>
    %19 = tpu.matmul %16, %18, %cst_19 {dimension_numbers = #tpu.dot_dimension_numbers<[1], [0], [0], [1], [0, 0, 1, 1], [], []>} : vector<48x4xf32>, vector<4x8xf32>, vector<48x8xf32> -> vector<48x8xf32>
    %20 = arith.addf %14, %19 : vector<48x8xf32>
    %c0_20 = arith.constant 0 : index
    %c1_21 = arith.constant 1 : index
    %c0_22 = arith.constant 0 : index
    %21 = vector.load %arg8[%c0_20, %c1_21, %c0_22] : memref<8x10x4xf32, #tpu.memory_space<vmem>>, vector<6x8x4xf32>
    %22 = vector.shape_cast %21 : vector<6x8x4xf32> to vector<48x4xf32>
    %c1_23 = arith.constant 1 : index
    %c0_24 = arith.constant 0 : index
    %c0_25 = arith.constant 0 : index
    %23 = vector.load %arg3[%c1_23, %c0_24, %c0_25] : memref<9x4x8xf32, #tpu.memory_space<vmem>>, vector<1x4x8xf32>
    %24 = vector.shape_cast %23 : vector<1x4x8xf32> to vector<4x8xf32>
    %cst_26 = arith.constant dense<0.000000e+00> : vector<48x8xf32>
    %25 = tpu.matmul %22, %24, %cst_26 {dimension_numbers = #tpu.dot_dimension_numbers<[1], [0], [0], [1], [0, 0, 1, 1], [], []>} : vector<48x4xf32>, vector<4x8xf32>, vector<48x8xf32> -> vector<48x8xf32>
    %26 = arith.addf %20, %25 : vector<48x8xf32>
    %c0_27 = arith.constant 0 : index
    %c2 = arith.constant 2 : index
    %c0_28 = arith.constant 0 : index
    %27 = vector.load %arg8[%c0_27, %c2, %c0_28] : memref<8x10x4xf32, #tpu.memory_space<vmem>>, vector<6x8x4xf32>
    %28 = vector.shape_cast %27 : vector<6x8x4xf32> to vector<48x4xf32>
    %c2_29 = arith.constant 2 : index
    %c0_30 = arith.constant 0 : index
    %c0_31 = arith.constant 0 : index
    %29 = vector.load %arg3[%c2_29, %c0_30, %c0_31] : memref<9x4x8xf32, #tpu.memory_space<vmem>>, vector<1x4x8xf32>
    %30 = vector.shape_cast %29 : vector<1x4x8xf32> to vector<4x8xf32>
    %cst_32 = arith.constant dense<0.000000e+00> : vector<48x8xf32>
    %31 = tpu.matmul %28, %30, %cst_32 {dimension_numbers = #tpu.dot_dimension_numbers<[1], [0], [0], [1], [0, 0, 1, 1], [], []>} : vector<48x4xf32>, vector<4x8xf32>, vector<48x8xf32> -> vector<48x8xf32>
    %32 = arith.addf %26, %31 : vector<48x8xf32>
    %c1_33 = arith.constant 1 : index
    %c0_34 = arith.constant 0 : index
    %c0_35 = arith.constant 0 : index
    %33 = vector.load %arg8[%c1_33, %c0_34, %c0_35] : memref<8x10x4xf32, #tpu.memory_space<vmem>>, vector<6x8x4xf32>
    %34 = vector.shape_cast %33 : vector<6x8x4xf32> to vector<48x4xf32>
    %c3 = arith.constant 3 : index
    %c0_36 = arith.constant 0 : index
    %c0_37 = arith.constant 0 : index
    %35 = vector.load %arg3[%c3, %c0_36, %c0_37] : memref<9x4x8xf32, #tpu.memory_space<vmem>>, vector<1x4x8xf32>
    %36 = vector.shape_cast %35 : vector<1x4x8xf32> to vector<4x8xf32>
    %cst_38 = arith.constant dense<0.000000e+00> : vector<48x8xf32>
    %37 = tpu.matmul %34, %36, %cst_38 {dimension_numbers = #tpu.dot_dimension_numbers<[1], [0], [0], [1], [0, 0, 1, 1], [], []>} : vector<48x4xf32>, vector<4x8xf32>, vector<48x8xf32> -> vector<48x8xf32>
    %38 = arith.addf %32, %37 : vector<48x8xf32>
    %c1_39 = arith.constant 1 : index
    %c1_40 = arith.constant 1 : index
    %c0_41 = arith.constant 0 : index
    %39 = vector.load %arg8[%c1_39, %c1_40, %c0_41] : memref<8x10x4xf32, #tpu.memory_space<vmem>>, vector<6x8x4xf32>
    %40 = vector.shape_cast %39 : vector<6x8x4xf32> to vector<48x4xf32>
    %c4 = arith.constant 4 : index
    %c0_42 = arith.constant 0 : index
    %c0_43 = arith.constant 0 : index
    %41 = vector.load %arg3[%c4, %c0_42, %c0_43] : memref<9x4x8xf32, #tpu.memory_space<vmem>>, vector<1x4x8xf32>
    %42 = vector.shape_cast %41 : vector<1x4x8xf32> to vector<4x8xf32>
    %cst_44 = arith.constant dense<0.000000e+00> : vector<48x8xf32>
    %43 = tpu.matmul %40, %42, %cst_44 {dimension_numbers = #tpu.dot_dimension_numbers<[1], [0], [0], [1], [0, 0, 1, 1], [], []>} : vector<48x4xf32>, vector<4x8xf32>, vector<48x8xf32> -> vector<48x8xf32>
    %44 = arith.addf %38, %43 : vector<48x8xf32>
    %c1_45 = arith.constant 1 : index
    %c2_46 = arith.constant 2 : index
    %c0_47 = arith.constant 0 : index
    %45 = vector.load %arg8[%c1_45, %c2_46, %c0_47] : memref<8x10x4xf32, #tpu.memory_space<vmem>>, vector<6x8x4xf32>
    %46 = vector.shape_cast %45 : vector<6x8x4xf32> to vector<48x4xf32>
    %c5 = arith.constant 5 : index
    %c0_48 = arith.constant 0 : index
    %c0_49 = arith.constant 0 : index
    %47 = vector.load %arg3[%c5, %c0_48, %c0_49] : memref<9x4x8xf32, #tpu.memory_space<vmem>>, vector<1x4x8xf32>
    %48 = vector.shape_cast %47 : vector<1x4x8xf32> to vector<4x8xf32>
    %cst_50 = arith.constant dense<0.000000e+00> : vector<48x8xf32>
    %49 = tpu.matmul %46, %48, %cst_50 {dimension_numbers = #tpu.dot_dimension_numbers<[1], [0], [0], [1], [0, 0, 1, 1], [], []>} : vector<48x4xf32>, vector<4x8xf32>, vector<48x8xf32> -> vector<48x8xf32>
    %50 = arith.addf %44, %49 : vector<48x8xf32>
    %c2_51 = arith.constant 2 : index
    %c0_52 = arith.constant 0 : index
    %c0_53 = arith.constant 0 : index
    %51 = vector.load %arg8[%c2_51, %c0_52, %c0_53] : memref<8x10x4xf32, #tpu.memory_space<vmem>>, vector<6x8x4xf32>
    %52 = vector.shape_cast %51 : vector<6x8x4xf32> to vector<48x4xf32>
    %c6 = arith.constant 6 : index
    %c0_54 = arith.constant 0 : index
    %c0_55 = arith.constant 0 : index
    %53 = vector.load %arg3[%c6, %c0_54, %c0_55] : memref<9x4x8xf32, #tpu.memory_space<vmem>>, vector<1x4x8xf32>
    %54 = vector.shape_cast %53 : vector<1x4x8xf32> to vector<4x8xf32>
    %cst_56 = arith.constant dense<0.000000e+00> : vector<48x8xf32>
    %55 = tpu.matmul %52, %54, %cst_56 {dimension_numbers = #tpu.dot_dimension_numbers<[1], [0], [0], [1], [0, 0, 1, 1], [], []>} : vector<48x4xf32>, vector<4x8xf32>, vector<48x8xf32> -> vector<48x8xf32>
    %56 = arith.addf %50, %55 : vector<48x8xf32>
    %c2_57 = arith.constant 2 : index
    %c1_58 = arith.constant 1 : index
    %c0_59 = arith.constant 0 : index
    %57 = vector.load %arg8[%c2_57, %c1_58, %c0_59] : memref<8x10x4xf32, #tpu.memory_space<vmem>>, vector<6x8x4xf32>
    %58 = vector.shape_cast %57 : vector<6x8x4xf32> to vector<48x4xf32>
    %c7 = arith.constant 7 : index
    %c0_60 = arith.constant 0 : index
    %c0_61 = arith.constant 0 : index
    %59 = vector.load %arg3[%c7, %c0_60, %c0_61] : memref<9x4x8xf32, #tpu.memory_space<vmem>>, vector<1x4x8xf32>
    %60 = vector.shape_cast %59 : vector<1x4x8xf32> to vector<4x8xf32>
    %cst_62 = arith.constant dense<0.000000e+00> : vector<48x8xf32>
    %61 = tpu.matmul %58, %60, %cst_62 {dimension_numbers = #tpu.dot_dimension_numbers<[1], [0], [0], [1], [0, 0, 1, 1], [], []>} : vector<48x4xf32>, vector<4x8xf32>, vector<48x8xf32> -> vector<48x8xf32>
    %62 = arith.addf %56, %61 : vector<48x8xf32>
    %c2_63 = arith.constant 2 : index
    %c2_64 = arith.constant 2 : index
    %c0_65 = arith.constant 0 : index
    %63 = vector.load %arg8[%c2_63, %c2_64, %c0_65] : memref<8x10x4xf32, #tpu.memory_space<vmem>>, vector<6x8x4xf32>
    %64 = vector.shape_cast %63 : vector<6x8x4xf32> to vector<48x4xf32>
    %c8 = arith.constant 8 : index
    %c0_66 = arith.constant 0 : index
    %c0_67 = arith.constant 0 : index
    %65 = vector.load %arg3[%c8, %c0_66, %c0_67] : memref<9x4x8xf32, #tpu.memory_space<vmem>>, vector<1x4x8xf32>
    %66 = vector.shape_cast %65 : vector<1x4x8xf32> to vector<4x8xf32>
    %cst_68 = arith.constant dense<0.000000e+00> : vector<48x8xf32>
    %67 = tpu.matmul %64, %66, %cst_68 {dimension_numbers = #tpu.dot_dimension_numbers<[1], [0], [0], [1], [0, 0, 1, 1], [], []>} : vector<48x4xf32>, vector<4x8xf32>, vector<48x8xf32> -> vector<48x8xf32>
    %68 = arith.addf %62, %67 : vector<48x8xf32>
    %c0_69 = arith.constant 0 : index
    %c0_70 = arith.constant 0 : index
    %69 = vector.load %arg4[%c0_69, %c0_70] : memref<1x8xf32, #tpu.memory_space<vmem>>, vector<1x8xf32>
    %70 = vector.broadcast %69 : vector<1x8xf32> to vector<48x8xf32>
    %71 = arith.addf %68, %70 : vector<48x8xf32>
    %cst_71 = arith.constant 0.000000e+00 : f32
    %72 = vector.broadcast %cst_71 : f32 to vector<48x8xf32>
    %73 = arith.maximumf %71, %72 : vector<48x8xf32>
    %74 = vector.shape_cast %73 : vector<48x8xf32> to vector<6x8x8xf32>
    %c0_72 = arith.constant 0 : index
    %c1_73 = arith.constant 1 : index
    %c0_74 = arith.constant 0 : index
    %75 = vector.load %arg9[%c0_72, %c1_73, %c0_74] : memref<6x10x8xf32, #tpu.memory_space<vmem>>, vector<6x8x8xf32>
    tpu.vector_store %arg9[%c0_72, %c1_73, %c0_74], %74 {strides = array<i32>} : memref<6x10x8xf32, #tpu.memory_space<vmem>>, vector<6x8x8xf32>,
    %cst_75 = arith.constant 0.000000e+00 : f32
    %76 = vector.broadcast %cst_75 : f32 to vector<6x1x8xf32>
    %c0_76 = arith.constant 0 : index
    %c0_77 = arith.constant 0 : index
    %c0_78 = arith.constant 0 : index
    %77 = vector.load %arg9[%c0_76, %c0_77, %c0_78] : memref<6x10x8xf32, #tpu.memory_space<vmem>>, vector<6x1x8xf32>
    tpu.vector_store %arg9[%c0_76, %c0_77, %c0_78], %76 {strides = array<i32>} : memref<6x10x8xf32, #tpu.memory_space<vmem>>, vector<6x1x8xf32>,
    %cst_79 = arith.constant 0.000000e+00 : f32
    %78 = vector.broadcast %cst_79 : f32 to vector<6x1x8xf32>
    %c0_80 = arith.constant 0 : index
    %c9_81 = arith.constant 9 : index
    %c0_82 = arith.constant 0 : index
    %79 = vector.load %arg9[%c0_80, %c9_81, %c0_82] : memref<6x10x8xf32, #tpu.memory_space<vmem>>, vector<6x1x8xf32>
    tpu.vector_store %arg9[%c0_80, %c9_81, %c0_82], %78 {strides = array<i32>} : memref<6x10x8xf32, #tpu.memory_space<vmem>>, vector<6x1x8xf32>,
    %c0_i32 = arith.constant 0 : i32
    %80 = arith.cmpi eq, %arg1, %c0_i32 : i32
    %81 = arith.extui %80 : i1 to i32
    %c0_i32_83 = arith.constant 0 : i32
    %82 = arith.cmpi ne, %81, %c0_i32_83 : i32
    scf.if %82 {
      %cst_156 = arith.constant 0.000000e+00 : f32
      %150 = vector.broadcast %cst_156 : f32 to vector<1x10x8xf32>
      %c0_157 = arith.constant 0 : index
      %c0_158 = arith.constant 0 : index
      %c0_159 = arith.constant 0 : index
      %151 = vector.load %arg9[%c0_157, %c0_158, %c0_159] : memref<6x10x8xf32, #tpu.memory_space<vmem>>, vector<1x10x8xf32>
      tpu.vector_store %arg9[%c0_157, %c0_158, %c0_159], %150 {strides = array<i32>} : memref<6x10x8xf32, #tpu.memory_space<vmem>>, vector<1x10x8xf32>,
    } else {
    }
    %c1_i32 = arith.constant 1 : i32
    %83 = arith.cmpi eq, %arg1, %c1_i32 : i32
    %84 = arith.extui %83 : i1 to i32
    %c0_i32_84 = arith.constant 0 : i32
    %85 = arith.cmpi ne, %84, %c0_i32_84 : i32
    scf.if %85 {
      %cst_156 = arith.constant 0.000000e+00 : f32
      %150 = vector.broadcast %cst_156 : f32 to vector<1x10x8xf32>
      %c5_157 = arith.constant 5 : index
      %c0_158 = arith.constant 0 : index
      %c0_159 = arith.constant 0 : index
      %151 = vector.load %arg9[%c5_157, %c0_158, %c0_159] : memref<6x10x8xf32, #tpu.memory_space<vmem>>, vector<1x10x8xf32>
      tpu.vector_store %arg9[%c5_157, %c0_158, %c0_159], %150 {strides = array<i32>} : memref<6x10x8xf32, #tpu.memory_space<vmem>>, vector<1x10x8xf32>,
    } else {
    }
    %cst_85 = arith.constant 0.000000e+00 : f32
    %86 = vector.broadcast %cst_85 : f32 to vector<32x8xf32>
    %c0_86 = arith.constant 0 : index
    %c0_87 = arith.constant 0 : index
    %c0_88 = arith.constant 0 : index
    %87 = vector.load %arg9[%c0_86, %c0_87, %c0_88] : memref<6x10x8xf32, #tpu.memory_space<vmem>>, vector<4x8x8xf32>
    %88 = vector.shape_cast %87 : vector<4x8x8xf32> to vector<32x8xf32>
    %c0_89 = arith.constant 0 : index
    %c0_90 = arith.constant 0 : index
    %c0_91 = arith.constant 0 : index
    %89 = vector.load %arg5[%c0_89, %c0_90, %c0_91] : memref<9x8x8xf32, #tpu.memory_space<vmem>>, vector<1x8x8xf32>
    %90 = vector.shape_cast %89 : vector<1x8x8xf32> to vector<8x8xf32>
    %cst_92 = arith.constant dense<0.000000e+00> : vector<32x8xf32>
    %91 = tpu.matmul %88, %90, %cst_92 {dimension_numbers = #tpu.dot_dimension_numbers<[1], [0], [0], [1], [0, 0, 1, 1], [], []>} : vector<32x8xf32>, vector<8x8xf32>, vector<32x8xf32> -> vector<32x8xf32>
    %92 = arith.addf %86, %91 : vector<32x8xf32>
    %c0_93 = arith.constant 0 : index
    %c1_94 = arith.constant 1 : index
    %c0_95 = arith.constant 0 : index
    %93 = vector.load %arg9[%c0_93, %c1_94, %c0_95] : memref<6x10x8xf32, #tpu.memory_space<vmem>>, vector<4x8x8xf32>
    %94 = vector.shape_cast %93 : vector<4x8x8xf32> to vector<32x8xf32>
    %c1_96 = arith.constant 1 : index
    %c0_97 = arith.constant 0 : index
    %c0_98 = arith.constant 0 : index
    %95 = vector.load %arg5[%c1_96, %c0_97, %c0_98] : memref<9x8x8xf32, #tpu.memory_space<vmem>>, vector<1x8x8xf32>
    %96 = vector.shape_cast %95 : vector<1x8x8xf32> to vector<8x8xf32>
    %cst_99 = arith.constant dense<0.000000e+00> : vector<32x8xf32>
    %97 = tpu.matmul %94, %96, %cst_99 {dimension_numbers = #tpu.dot_dimension_numbers<[1], [0], [0], [1], [0, 0, 1, 1], [], []>} : vector<32x8xf32>, vector<8x8xf32>, vector<32x8xf32> -> vector<32x8xf32>
    %98 = arith.addf %92, %97 : vector<32x8xf32>
    %c0_100 = arith.constant 0 : index
    %c2_101 = arith.constant 2 : index
    %c0_102 = arith.constant 0 : index
    %99 = vector.load %arg9[%c0_100, %c2_101, %c0_102] : memref<6x10x8xf32, #tpu.memory_space<vmem>>, vector<4x8x8xf32>
    %100 = vector.shape_cast %99 : vector<4x8x8xf32> to vector<32x8xf32>
    %c2_103 = arith.constant 2 : index
    %c0_104 = arith.constant 0 : index
    %c0_105 = arith.constant 0 : index
    %101 = vector.load %arg5[%c2_103, %c0_104, %c0_105] : memref<9x8x8xf32, #tpu.memory_space<vmem>>, vector<1x8x8xf32>
    %102 = vector.shape_cast %101 : vector<1x8x8xf32> to vector<8x8xf32>
    %cst_106 = arith.constant dense<0.000000e+00> : vector<32x8xf32>
    %103 = tpu.matmul %100, %102, %cst_106 {dimension_numbers = #tpu.dot_dimension_numbers<[1], [0], [0], [1], [0, 0, 1, 1], [], []>} : vector<32x8xf32>, vector<8x8xf32>, vector<32x8xf32> -> vector<32x8xf32>
    %104 = arith.addf %98, %103 : vector<32x8xf32>
    %c1_107 = arith.constant 1 : index
    %c0_108 = arith.constant 0 : index
    %c0_109 = arith.constant 0 : index
    %105 = vector.load %arg9[%c1_107, %c0_108, %c0_109] : memref<6x10x8xf32, #tpu.memory_space<vmem>>, vector<4x8x8xf32>
    %106 = vector.shape_cast %105 : vector<4x8x8xf32> to vector<32x8xf32>
    %c3_110 = arith.constant 3 : index
    %c0_111 = arith.constant 0 : index
    %c0_112 = arith.constant 0 : index
    %107 = vector.load %arg5[%c3_110, %c0_111, %c0_112] : memref<9x8x8xf32, #tpu.memory_space<vmem>>, vector<1x8x8xf32>
    %108 = vector.shape_cast %107 : vector<1x8x8xf32> to vector<8x8xf32>
    %cst_113 = arith.constant dense<0.000000e+00> : vector<32x8xf32>
    %109 = tpu.matmul %106, %108, %cst_113 {dimension_numbers = #tpu.dot_dimension_numbers<[1], [0], [0], [1], [0, 0, 1, 1], [], []>} : vector<32x8xf32>, vector<8x8xf32>, vector<32x8xf32> -> vector<32x8xf32>
    %110 = arith.addf %104, %109 : vector<32x8xf32>
    %c1_114 = arith.constant 1 : index
    %c1_115 = arith.constant 1 : index
    %c0_116 = arith.constant 0 : index
    %111 = vector.load %arg9[%c1_114, %c1_115, %c0_116] : memref<6x10x8xf32, #tpu.memory_space<vmem>>, vector<4x8x8xf32>
    %112 = vector.shape_cast %111 : vector<4x8x8xf32> to vector<32x8xf32>
    %c4_117 = arith.constant 4 : index
    %c0_118 = arith.constant 0 : index
    %c0_119 = arith.constant 0 : index
    %113 = vector.load %arg5[%c4_117, %c0_118, %c0_119] : memref<9x8x8xf32, #tpu.memory_space<vmem>>, vector<1x8x8xf32>
    %114 = vector.shape_cast %113 : vector<1x8x8xf32> to vector<8x8xf32>
    %cst_120 = arith.constant dense<0.000000e+00> : vector<32x8xf32>
    %115 = tpu.matmul %112, %114, %cst_120 {dimension_numbers = #tpu.dot_dimension_numbers<[1], [0], [0], [1], [0, 0, 1, 1], [], []>} : vector<32x8xf32>, vector<8x8xf32>, vector<32x8xf32> -> vector<32x8xf32>
    %116 = arith.addf %110, %115 : vector<32x8xf32>
    %c1_121 = arith.constant 1 : index
    %c2_122 = arith.constant 2 : index
    %c0_123 = arith.constant 0 : index
    %117 = vector.load %arg9[%c1_121, %c2_122, %c0_123] : memref<6x10x8xf32, #tpu.memory_space<vmem>>, vector<4x8x8xf32>
    %118 = vector.shape_cast %117 : vector<4x8x8xf32> to vector<32x8xf32>
    %c5_124 = arith.constant 5 : index
    %c0_125 = arith.constant 0 : index
    %c0_126 = arith.constant 0 : index
    %119 = vector.load %arg5[%c5_124, %c0_125, %c0_126] : memref<9x8x8xf32, #tpu.memory_space<vmem>>, vector<1x8x8xf32>
    %120 = vector.shape_cast %119 : vector<1x8x8xf32> to vector<8x8xf32>
    %cst_127 = arith.constant dense<0.000000e+00> : vector<32x8xf32>
    %121 = tpu.matmul %118, %120, %cst_127 {dimension_numbers = #tpu.dot_dimension_numbers<[1], [0], [0], [1], [0, 0, 1, 1], [], []>} : vector<32x8xf32>, vector<8x8xf32>, vector<32x8xf32> -> vector<32x8xf32>
    %122 = arith.addf %116, %121 : vector<32x8xf32>
    %c2_128 = arith.constant 2 : index
    %c0_129 = arith.constant 0 : index
    %c0_130 = arith.constant 0 : index
    %123 = vector.load %arg9[%c2_128, %c0_129, %c0_130] : memref<6x10x8xf32, #tpu.memory_space<vmem>>, vector<4x8x8xf32>
    %124 = vector.shape_cast %123 : vector<4x8x8xf32> to vector<32x8xf32>
    %c6_131 = arith.constant 6 : index
    %c0_132 = arith.constant 0 : index
    %c0_133 = arith.constant 0 : index
    %125 = vector.load %arg5[%c6_131, %c0_132, %c0_133] : memref<9x8x8xf32, #tpu.memory_space<vmem>>, vector<1x8x8xf32>
    %126 = vector.shape_cast %125 : vector<1x8x8xf32> to vector<8x8xf32>
    %cst_134 = arith.constant dense<0.000000e+00> : vector<32x8xf32>
    %127 = tpu.matmul %124, %126, %cst_134 {dimension_numbers = #tpu.dot_dimension_numbers<[1], [0], [0], [1], [0, 0, 1, 1], [], []>} : vector<32x8xf32>, vector<8x8xf32>, vector<32x8xf32> -> vector<32x8xf32>
    %128 = arith.addf %122, %127 : vector<32x8xf32>
    %c2_135 = arith.constant 2 : index
    %c1_136 = arith.constant 1 : index
    %c0_137 = arith.constant 0 : index
    %129 = vector.load %arg9[%c2_135, %c1_136, %c0_137] : memref<6x10x8xf32, #tpu.memory_space<vmem>>, vector<4x8x8xf32>
    %130 = vector.shape_cast %129 : vector<4x8x8xf32> to vector<32x8xf32>
    %c7_138 = arith.constant 7 : index
    %c0_139 = arith.constant 0 : index
    %c0_140 = arith.constant 0 : index
    %131 = vector.load %arg5[%c7_138, %c0_139, %c0_140] : memref<9x8x8xf32, #tpu.memory_space<vmem>>, vector<1x8x8xf32>
    %132 = vector.shape_cast %131 : vector<1x8x8xf32> to vector<8x8xf32>
    %cst_141 = arith.constant dense<0.000000e+00> : vector<32x8xf32>
    %133 = tpu.matmul %130, %132, %cst_141 {dimension_numbers = #tpu.dot_dimension_numbers<[1], [0], [0], [1], [0, 0, 1, 1], [], []>} : vector<32x8xf32>, vector<8x8xf32>, vector<32x8xf32> -> vector<32x8xf32>
    %134 = arith.addf %128, %133 : vector<32x8xf32>
    %c2_142 = arith.constant 2 : index
    %c2_143 = arith.constant 2 : index
    %c0_144 = arith.constant 0 : index
    %135 = vector.load %arg9[%c2_142, %c2_143, %c0_144] : memref<6x10x8xf32, #tpu.memory_space<vmem>>, vector<4x8x8xf32>
    %136 = vector.shape_cast %135 : vector<4x8x8xf32> to vector<32x8xf32>
    %c8_145 = arith.constant 8 : index
    %c0_146 = arith.constant 0 : index
    %c0_147 = arith.constant 0 : index
    %137 = vector.load %arg5[%c8_145, %c0_146, %c0_147] : memref<9x8x8xf32, #tpu.memory_space<vmem>>, vector<1x8x8xf32>
    %138 = vector.shape_cast %137 : vector<1x8x8xf32> to vector<8x8xf32>
    %cst_148 = arith.constant dense<0.000000e+00> : vector<32x8xf32>
    %139 = tpu.matmul %136, %138, %cst_148 {dimension_numbers = #tpu.dot_dimension_numbers<[1], [0], [0], [1], [0, 0, 1, 1], [], []>} : vector<32x8xf32>, vector<8x8xf32>, vector<32x8xf32> -> vector<32x8xf32>
    %140 = arith.addf %134, %139 : vector<32x8xf32>
    %c0_149 = arith.constant 0 : index
    %c0_150 = arith.constant 0 : index
    %141 = vector.load %arg6[%c0_149, %c0_150] : memref<1x8xf32, #tpu.memory_space<vmem>>, vector<1x8xf32>
    %142 = vector.broadcast %141 : vector<1x8xf32> to vector<32x8xf32>
    %143 = arith.addf %140, %142 : vector<32x8xf32>
    %cst_151 = arith.constant 0.000000e+00 : f32
    %144 = vector.broadcast %cst_151 : f32 to vector<32x8xf32>
    %145 = arith.maximumf %143, %144 : vector<32x8xf32>
    %146 = vector.shape_cast %145 : vector<32x8xf32> to vector<4x8x8xf32>
    %c0_152 = arith.constant 0 : index
    %c0_153 = arith.constant 0 : index
    %c0_154 = arith.constant 0 : index
    %c0_155 = arith.constant 0 : index
    %147 = vector.load %arg7[%c0_152, %c0_153, %c0_154, %c0_155] : memref<1x4x8x8xf32, #tpu.memory_space<vmem>>, vector<1x4x8x8xf32>
    %148 = vector.shape_cast %147 : vector<1x4x8x8xf32> to vector<4x8x8xf32>
    %149 = vector.shape_cast %146 : vector<4x8x8xf32> to vector<1x4x8x8xf32>
    tpu.vector_store %arg7[%c0_152, %c0_153, %c0_154, %c0_155], %149 {strides = array<i32>} : memref<1x4x8x8xf32, #tpu.memory_space<vmem>>, vector<1x4x8x8xf32>,
    return
  }
  func.func @transform_0(%arg0: i32, %arg1: i32) -> (i32, i32, i32, i32, i32) {
    %c0_i32 = arith.constant 0 : i32
    %c0_i32_0 = arith.constant 0 : i32
    %c0_i32_1 = arith.constant 0 : i32
    %c0_i32_2 = arith.constant 0 : i32
    return %arg0, %arg1, %c0_i32, %c0_i32_0, %c0_i32_1 : i32, i32, i32, i32, i32
  }
  func.func @transform_1(%arg0: i32, %arg1: i32) -> (i32, i32, i32) {
    %c0_i32 = arith.constant 0 : i32
    %c0_i32_0 = arith.constant 0 : i32
    %c0_i32_1 = arith.constant 0 : i32
    %c0_i32_2 = arith.constant 0 : i32
    return %c0_i32, %c0_i32_0, %c0_i32_1 : i32, i32, i32
  }
  func.func @transform_2(%arg0: i32, %arg1: i32) -> (i32, i32) {
    %c0_i32 = arith.constant 0 : i32
    %c0_i32_0 = arith.constant 0 : i32
    %c0_i32_1 = arith.constant 0 : i32
    return %c0_i32, %c0_i32_0 : i32, i32
  }
  func.func @transform_3(%arg0: i32, %arg1: i32) -> (i32, i32, i32) {
    %c0_i32 = arith.constant 0 : i32
    %c0_i32_0 = arith.constant 0 : i32
    %c0_i32_1 = arith.constant 0 : i32
    %c0_i32_2 = arith.constant 0 : i32
    return %c0_i32, %c0_i32_0, %c0_i32_1 : i32, i32, i32
  }
  func.func @transform_4(%arg0: i32, %arg1: i32) -> (i32, i32) {
    %c0_i32 = arith.constant 0 : i32
    %c0_i32_0 = arith.constant 0 : i32
    %c0_i32_1 = arith.constant 0 : i32
    return %c0_i32, %c0_i32_0 : i32, i32
  }
  func.func @transform_5(%arg0: i32, %arg1: i32) -> (i32, i32, i32, i32) {
    %c0_i32 = arith.constant 0 : i32
    %c0_i32_0 = arith.constant 0 : i32
    %c0_i32_1 = arith.constant 0 : i32
    return %arg0, %arg1, %c0_i32, %c0_i32_0 : i32, i32, i32, i32
  }
}

</mosaic_0001>

<bundles_post_ra>
// kernel: _lambda_.1
= control target key start
LH: loop header
LB: loop body
LE: loop exit
PB: predicated region body
PF: predicated region fallthrough
CT: control target
= control target key end

     0   :  { %s3189_s18 = smov 0   ;;  %s3191_s19 = smov 0   ;;  %s3488_s0 = inlined_call_operand.vmem [shape: f32[2,2,8,8,16], index: 0, kind: input, shape index: {}]   ;;  %s3489_s1 = inlined_call_operand.vmem [shape: f32[9,4,8], index: 1, kind: input, shape index: {}]   ;;  %s3490_s2 = inlined_call_operand.vmem [shape: f32[1,8], index: 2, kind: input, shape index: {}]   ;;  %s3491_s3 = inlined_call_operand.vmem [shape: f32[9,8,8], index: 3, kind: input, shape index: {}]   ;;  %s3492_s4 = inlined_call_operand.vmem [shape: f32[1,8], index: 4, kind: input, shape index: {}]   ;;  %s3493_s5 = inlined_call_operand.vmem [shape: f32[2,8,8,8], index: 5, kind: output, shape index: {}]  }
   0x1   :  { %s3193_s20 = smov 0   ;;  %s3195_s21 = smov 0  }
   0x2   :  { %s3197_s22 = smov 0  }
   0x3 LB: > { %s24_s23 = sadd.s32 1, %s3144_s20  ;;  %s27_s24 = sadd.s32 1, %s3148_s21  ;;  %s3152_s22 = sphi %s3197_s22, %s15_s22   ;;  %s3148_s21 = sphi %s3195_s21, %s3497_s21   ;;  %s3144_s20 = sphi %s3193_s20, %s3496_s20   ;;  %s3140_s19 = sphi %s3191_s19, %s3495_s19   ;;  %s3136_s18 = sphi %s3189_s18, %s3494_s18  }
   0x4   : > { %p25_p0 = scmp.ge.s32.totalorder %s24_s23, 2  ;;  %p2662_p1 = scmp.ge.s32.totalorder %s3152_s22, 1 }
   0x5   : > { %p207_p2 = scmp.lt.s32.totalorder %s3152_s22, 5 }
   0x6   : > { %s3499_s23 = smov (%p25_p0, %s24_s23), 0  ;;  %s3501_s24 = smov (!%p25_p0, %s27_s24), %s3148_s21 }
   0x7   : > { %p208_p3 = pnand %p2662_p1, %p207_p2  ;;  %p29_p4 = scmp.ge.s32.totalorder %s3501_s24, 2 }
   0x8   : > { %p243_p5 = scmp.lt.s32.totalorder (!%p208_p3), %s3140_s19, 1  ;;  %p245_p6 = scmp.lt.s32.totalorder (!%p208_p3), %s3136_s18, 1 }
   0x9   : > { %s3503_s24 = smov (%p29_p4, %s3501_s24), 0  ;;  %211 = sbr.rel (%p208_p3) target bundleno = 782 (0x30e), region = 40 }
   0xa   : > { %s2666_s25 = sshll.u32 (!%p208_p3), %s3136_s18, 2  ;;  %s3154_s10 = smov (!%p208_p3), 124  }
   0xb   : > { %p255_p7 = scmp.lt.s32.totalorder (!%p208_p3), %s2666_s25, 7  ;;  %p2741_p8 = scmp.ne.s32.totalorder (!%p208_p3), %s3136_s18, 0 }
   0xe   : > { %s3505_s19 = smov (!%p243_p5, %s3140_s19), 1  ;;  %s3507_s25 = smov (!%p255_p7, %s2666_s25), 7  ;;  %vm359_vm0 = vcmask 24576   ;;  %v3155_v8 = vmov 0.0   ;;  %vm1562_vm1 = vcmask 57344   ;;  %vm409_vm2 = vcmask 1043456  }
   0xf   : > { %s246_s26 = scalar_select %p245_p6, %s3136_s18, 1  ;;  %360 = vst.msk [vmem:[#allocation2] sm:$0x1] %vm359_vm0, %v3155_v8  ;;  %361 = vst.msk [vmem:[#allocation2 + $0x10] sm:$0x1] %vm359_vm0, %v3155_v8  ;;  %vm350_vm3 = vcmask 31744  }
  0x10   : > { %s2664_s27 = sshll.u32 %s3505_s19, 4  ;;  %s2667_s9 = sshll.u32 %s3505_s19, 3  ;;  %362 = vst.msk [vmem:[#allocation2 + $0x20] sm:$0x1] %vm359_vm0, %v3155_v8  ;;  %363 = vst.msk [vmem:[#allocation2 + $0x30] sm:$0x1] %vm359_vm0, %v3155_v8 }
  0x11   : > { %s2663_s28 = sshll.u32 %s246_s26, 3  ;;  %s258_s11 = sadd.s32 %s2667_s9, %s3507_s25  ;;  %364 = vst.msk [vmem:[#allocation2 + $0x40] sm:$0x1] %vm359_vm0, %v3155_v8  ;;  %365 = vst.msk [vmem:[#allocation2 + $0x50] sm:$0x1] %vm359_vm0, %v3155_v8  ;;  %vm1555_vm4 = vcmask 64512  }
  0x12   : > { %s249_s29 = sadd.s32 %s2664_s27, %s2663_s28  ;;  %s2668_s12 = sshll.u32 %s258_s11, 3  ;;  %366 = vst.msk [vmem:[#allocation2 + $0x60] sm:$0x1] %vm359_vm0, %v3155_v8  ;;  %367 = vst.msk [vmem:[#allocation2 + $0x70] sm:$0x1] %vm359_vm0, %v3155_v8 }
  0x13   : > { %s2665_s30 = sshll.u32 %s249_s29, 3  ;;  %s3232_s15 = scalar_lea.vmem %s3493_s5, %s2668_s12  ;;  %368 = vst.msk [vmem:[#allocation2 + $0x9] sm:$0x1] %vm359_vm0, %v3155_v8  ;;  %369 = vst.msk [vmem:[#allocation2 + $0x19] sm:$0x1] %vm359_vm0, %v3155_v8 }
  0x14   : > { %s251_s8 = scalar_lea.vmem %s3488_s0, %s2665_s30  ;;  %370 = vst.msk [vmem:[#allocation2 + $0x29] sm:$0x1] %vm359_vm0, %v3155_v8  ;;  %371 = vst.msk [vmem:[#allocation2 + $0x39] sm:$0x1] %vm359_vm0, %v3155_v8  ;;  %v2669_v11 = vld [vmem:[%s3489_s1 + $0x4] sm:$0xf] }
  0x15   : > { %v262_v0 = vld [vmem:[%s251_s8] sm:$0xff]  ;;  %v264_v1 = vld [vmem:[%s251_s8 + $0x10] sm:$0xff]  ;;  %v263_v2 = vld [vmem:[%s251_s8 + $0x8] sm:$0xff]  ;;  %372 = vst.msk [vmem:[#allocation2 + $0x49] sm:$0x1] %vm359_vm0, %v3155_v8  ;;  %2898 = vmatprep.subr.msk.mxu0 %vm409_vm2, %v2669_v11  ;;  %s3156_s26 = smov 120  }
  0x16   : > { %278 = vrot.lane.b32.xlu0 %v262_v0, %s3154_s10  ;;  %282 = vrot.lane.b32.xlu1 %v264_v1, %s3154_s10  ;;  %v3227_v3 = vld [vmem:[%s251_s8 + $0x18] sm:$0xff]  ;;  %v266_v4 = vld [vmem:[%s251_s8 + $0x20] sm:$0xff]  ;;  %373 = vst.msk [vmem:[#allocation2 + $0x59] sm:$0x1] %vm359_vm0, %v3155_v8  ;;  %374 = vst.msk [vmem:[#allocation2 + $0x69] sm:$0x1] %vm359_vm0, %v3155_v8 }
  0x17   : > { %v3235_v5 = vld [vmem:[%s251_s8 + $0x28] sm:$0xff]  ;;  %v3238_v6 = vld [vmem:[%s251_s8 + $0x30] sm:$0xff]  ;;  %v3240_v7 = vld [vmem:[%s251_s8 + $0x38] sm:$0xff]  ;;  %375 = vst.msk [vmem:[#allocation2 + $0x79] sm:$0x1] %vm359_vm0, %v3155_v8  ;;  %2899 = vmatpush3.msk.msra.mxu0 %vm409_vm2, %v2669_v11 }
  0x18   : > { %1563 = vst.msk [vmem:[#allocation3] sm:$0x1] %vm1562_vm1, %v3155_v8  ;;  %1564 = vst.msk [vmem:[#allocation3 + $0x10] sm:$0x1] %vm1562_vm1, %v3155_v8  ;;  %v382_v13 = vld [vmem:[%s3489_s1] sm:$0xf] }
  0x19   : > { %1565 = vst.msk [vmem:[#allocation3 + $0x20] sm:$0x1] %vm1562_vm1, %v3155_v8  ;;  %1566 = vst.msk [vmem:[#allocation3 + $0x30] sm:$0x1] %vm1562_vm1, %v3155_v8  ;;  %2909 = vmatprep.subr.msk.mxu1 %vm409_vm2, %v382_v13  ;;  %v2684_v17 = vld [vmem:[%s3489_s1 + $0x8] sm:$0xf] }
  0x1a   : > { %280 = vrot.lane.b32.xlu0 %v263_v2, %s3154_s10  ;;  %284 = vrot.lane.b32.xlu1 %v3227_v3, %s3154_s10  ;;  %1567 = vst.msk [vmem:[#allocation3 + $0x40] sm:$0x1] %vm1562_vm1, %v3155_v8  ;;  %1568 = vst.msk [vmem:[#allocation3 + $0x50] sm:$0x1] %vm1562_vm1, %v3155_v8  ;;  %v2692_v27 = vld [vmem:[%s3489_s1 + $0xc] sm:$0xf] }
  0x1b   : > { %1569 = vst.msk [vmem:[#allocation3 + $0x9] sm:$0x1] %vm1562_vm1, %v3155_v8  ;;  %1570 = vst.msk [vmem:[#allocation3 + $0x19] sm:$0x1] %vm1562_vm1, %v3155_v8  ;;  %2910 = vmatpush3.msk.msra.mxu1 %vm409_vm2, %v382_v13  ;;  %2920 = vmatprep.subr.msk.mxu0 %vm409_vm2, %v2684_v17  ;;  %v2700_v49 = vld [vmem:[%s3489_s1 + $0x10] sm:$0xf] }
  0x1c   : > { %1571 = vst.msk [vmem:[#allocation3 + $0x29] sm:$0x1] %vm1562_vm1, %v3155_v8  ;;  %1572 = vst.msk [vmem:[#allocation3 + $0x39] sm:$0x1] %vm1562_vm1, %v3155_v8  ;;  %2931 = vmatprep.subr.msk.mxu1 %vm409_vm2, %v2692_v27  ;;  %v2708_v50 = vld [vmem:[%s3489_s1 + $0x14] sm:$0xf] }
  0x1d   : > { %1573 = vst.msk [vmem:[#allocation3 + $0x49] sm:$0x1] %vm1562_vm1, %v3155_v8  ;;  %1574 = vst.msk [vmem:[#allocation3 + $0x59] sm:$0x1] %vm1562_vm1, %v3155_v8  ;;  %v2716_v62 = vld [vmem:[%s3489_s1 + $0x18] sm:$0xf] }
  0x1e   : > { %286 = vrot.lane.b32.xlu0 %v266_v4, %s3154_s10  ;;  %288 = vrot.lane.b32.xlu1 %v3235_v5, %s3154_s10  ;;  %v2724_v63 = vld [vmem:[%s3489_s1 + $0x1c] sm:$0xf] }
  0x22   : > { %290 = vrot.lane.b32.xlu0 %v3238_v6, %s3154_s10  ;;  %292 = vrot.lane.b32.xlu1 %v3240_v7, %s3154_s10 }
  0x88   : > { %v279_v9 = vpop.permute.xlu0 %278  ;;  %v283_v10 = vpop.permute.xlu1 %282 }
  0x89   : > { %v302_v12 = vmax.f32 %v262_v0, %v279_v9  ;;  %v304_v14 = vmax.f32 %v264_v1, %v283_v10 }
  0x8b   : > { %318 = vrot.lane.b32.xlu0 %v302_v12, %s3156_s26 }
  0x8c   : > { %v281_v15 = vpop.permute.xlu0 %280  ;;  %v285_v16 = vpop.permute.xlu1 %284 }
  0x8d   : > { %v303_v18 = vmax.f32 %v263_v2, %v281_v15  ;;  %v305_v19 = vmax.f32 %v3227_v3, %v285_v16 }
  0x8f   : > { %322 = vrot.lane.b32.xlu0 %v304_v14, %s3156_s26  ;;  %320 = vrot.lane.b32.xlu1 %v303_v18, %s3156_s26 }
  0x90   : > { %v287_v20 = vpop.permute.xlu0 %286  ;;  %v289_v21 = vpop.permute.xlu1 %288 }
  0x91   : > { %v306_v22 = vmax.f32 %v266_v4, %v287_v20  ;;  %v307_v23 = vmax.f32 %v3235_v5, %v289_v21  ;;  %v2732_v4 = vld [vmem:[%s3489_s1 + $0x20] sm:$0xf] }
  0x93   : > { %324 = vrot.lane.b32.xlu1 %v305_v19, %s3156_s26  ;;  %326 = vrot.lane.b32.xlu0 %v306_v22, %s3156_s26 }
  0x94   : > { %v291_v24 = vpop.permute.xlu0 %290  ;;  %v293_v25 = vpop.permute.xlu1 %292 }
  0x95   : > { %v308_v26 = vmax.f32 %v3238_v6, %v291_v24  ;;  %v309_v28 = vmax.f32 %v3240_v7, %v293_v25 }
  0x97   : > { %328 = vrot.lane.b32.xlu1 %v307_v23, %s3156_s26  ;;  %330 = vrot.lane.b32.xlu0 %v308_v26, %s3156_s26 }
  0x9b   : > { %332 = vrot.lane.b32.xlu1 %v309_v28, %s3156_s26 }
  0xfd   : > { %v319_v29 = vpop.permute.xlu0 %318 }
  0xfe   : > { %v342_v30 = vmax.f32 %v302_v12, %v319_v29 }
 0x100   : > { %351 = vst.msk [vmem:[#allocation2 + $0x1] sm:$0xff] %vm350_vm3, %v342_v30 }
 0x101   : > { %v321_v31 = vpop.permute.xlu1 %320  ;;  %v323_v32 = vpop.permute.xlu0 %322 }
 0x102   : > { %v343_v33 = vmax.f32 %v303_v18, %v321_v31  ;;  %v344_v34 = vmax.f32 %v304_v14, %v323_v32 }
 0x104   : > { %352 = vst.msk [vmem:[#allocation2 + $0x11] sm:$0xff] %vm350_vm3, %v343_v33  ;;  %353 = vst.msk [vmem:[#allocation2 + $0x21] sm:$0xff] %vm350_vm3, %v344_v34 }
 0x105   : > { %v325_v35 = vpop.permute.xlu1 %324  ;;  %v327_v36 = vpop.permute.xlu0 %326 }
 0x106   : > { %v345_v37 = vmax.f32 %v305_v19, %v325_v35  ;;  %v346_v38 = vmax.f32 %v306_v22, %v327_v36 }
 0x107   : > { %v383_v39 = vld [vmem:[#allocation2 + $0x1] sm:$0xff] }
 0x108   : > { %v376_v40 = vld [vmem:[#allocation2] sm:$0xff]  ;;  %354 = vst.msk [vmem:[#allocation2 + $0x31] sm:$0xff] %vm350_vm3, %v345_v37  ;;  %355 = vst.msk [vmem:[#allocation2 + $0x41] sm:$0xff] %vm350_vm3, %v346_v38  ;;  %2900 = vmatprep.mubr.msk.f32.mxu0 %vm350_vm3, %v383_v39 }
 0x109   : > { %2911 = vmatprep.mubr.msk.f32.mxu1 %vm350_vm3, %v376_v40  ;;  %v329_v41 = vpop.permute.xlu1 %328  ;;  %v331_v42 = vpop.permute.xlu0 %330  ;;  %v624_v59 = vld [vmem:[#allocation2 + $0x2] sm:$0xff] }
 0x10a   : > { %v347_v43 = vmax.f32 %v307_v23, %v329_v41  ;;  %v348_v44 = vmax.f32 %v308_v26, %v331_v42 }
 0x10b   : > { %v384_v45 = vld [vmem:[#allocation2 + $0x11] sm:$0xff]  ;;  %v3289_v47 = vld [vmem:[#allocation2 + $0x21] sm:$0xff] }
 0x10c   : > { %v377_v46 = vld [vmem:[#allocation2 + $0x10] sm:$0xff]  ;;  %356 = vst.msk [vmem:[#allocation2 + $0x51] sm:$0xff] %vm350_vm3, %v347_v43  ;;  %357 = vst.msk [vmem:[#allocation2 + $0x61] sm:$0xff] %vm350_vm3, %v348_v44  ;;  %2901 = vmatmul.mubr.msk.f32.vlgmr.msra.gmra.mxu0 %vm350_vm3, %v384_v45  ;;  %v3295_v48 = vld [vmem:[#allocation2 + $0x20] sm:$0xff] }
 0x10d   : > { %2912 = vmatmul.mubr.msk.f32.vlgmr.msra.gmra.mxu1 %vm350_vm3, %v377_v46  ;;  %2921 = vmatpush3.msk.msra.mxu0 %vm409_vm2, %v2684_v17  ;;  %v333_v51 = vpop.permute.xlu1 %332  ;;  %v625_v60 = vld [vmem:[#allocation2 + $0x12] sm:$0xff]  ;;  %v626_v61 = vld [vmem:[#allocation2 + $0x22] sm:$0xff] }
 0x10e   : > { %2903 = vmatprep.mubr.msk.f32.mxu0 %vm350_vm3, %v3289_v47  ;;  %v349_v52 = vmax.f32 %v309_v28, %v333_v51  ;;  %2914 = vmatprep.mubr.msk.f32.mxu1 %vm350_vm3, %v3295_v48 }
 0x10f   : > { %2932 = vmatpush3.msk.msra.mxu1 %vm409_vm2, %v2692_v27  ;;  %v386_v53 = vld [vmem:[#allocation2 + $0x31] sm:$0xff]  ;;  %v387_v55 = vld [vmem:[#allocation2 + $0x41] sm:$0xff]  ;;  %2942 = vmatprep.subr.msk.mxu0 %vm409_vm2, %v2700_v49 }
 0x110   : > { %v379_v54 = vld [vmem:[#allocation2 + $0x30] sm:$0xff]  ;;  %2953 = vmatprep.subr.msk.mxu1 %vm409_vm2, %v2708_v50  ;;  %358 = vst.msk [vmem:[#allocation2 + $0x71] sm:$0xff] %vm350_vm3, %v349_v52  ;;  %2904 = vmatmul.mubr.msk.f32.gmra.mxu0 %vm350_vm3, %v386_v53  ;;  %v380_v56 = vld [vmem:[#allocation2 + $0x40] sm:$0xff] }
 0x111   : > { %2915 = vmatmul.mubr.msk.f32.gmra.mxu1 %vm350_vm3, %v379_v54  ;;  %2906 = vmatprep.mubr.msk.f32.mxu0 %vm350_vm3, %v387_v55  ;;  %v627_v0 = vld [vmem:[#allocation2 + $0x32] sm:$0xff]  ;;  %v628_v1 = vld [vmem:[#allocation2 + $0x42] sm:$0xff] }
 0x112   : > { %2917 = vmatprep.mubr.msk.f32.mxu1 %vm350_vm3, %v380_v56 }
 0x113   : > { %v388_v57 = vld [vmem:[#allocation2 + $0x51] sm:$0xff]  ;;  %v760_v3 = vld [vmem:[#allocation2 + $0x60] sm:$0xff] }
 0x114   : > { %v381_v58 = vld [vmem:[#allocation2 + $0x50] sm:$0xff]  ;;  %2907 = vmatmul.mubr.msk.f32.gmra.mxu0 %vm350_vm3, %v388_v57  ;;  %v890_v5 = vld [vmem:[#allocation2 + $0x61] sm:$0xff] }
 0x115   : > { %2918 = vmatmul.mubr.msk.f32.gmra.mxu1 %vm350_vm3, %v381_v58  ;;  %2922 = vmatprep.mubr.msk.f32.mxu0 %vm350_vm3, %v624_v59  ;;  %v629_v2 = vld [vmem:[#allocation2 + $0x52] sm:$0xff]  ;;  %v1020_v6 = vld [vmem:[#allocation2 + $0x62] sm:$0xff] }
 0x116   : > { %2933 = vmatprep.mubr.msk.f32.mxu1 %vm350_vm3, %v377_v46 }
 0x117   : > { %v1151_v7 = vld [vmem:[#allocation2 + $0x70] sm:$0xff] }
 0x118   : > { %2923 = vmatmul.mubr.msk.f32.vlgmr.msra.gmra.mxu0 %vm350_vm3, %v625_v60  ;;  %v1281_v8 = vld [vmem:[#allocation2 + $0x71] sm:$0xff] }
 0x119   : > { %2934 = vmatmul.mubr.msk.f32.vlgmr.msra.gmra.mxu1 %vm350_vm3, %v3295_v48  ;;  %2943 = vmatpush3.msk.msra.mxu0 %vm409_vm2, %v2700_v49  ;;  %v1411_v9 = vld [vmem:[#allocation2 + $0x72] sm:$0xff] }
 0x11a   : > { %2925 = vmatprep.mubr.msk.f32.mxu0 %vm350_vm3, %v626_v61  ;;  %2936 = vmatprep.mubr.msk.f32.mxu1 %vm350_vm3, %v379_v54 }
 0x11b   : > { %2954 = vmatpush3.msk.msra.mxu1 %vm409_vm2, %v2708_v50  ;;  %2964 = vmatprep.subr.msk.mxu0 %vm409_vm2, %v2716_v62 }
 0x11c   : > { %2975 = vmatprep.subr.msk.mxu1 %vm409_vm2, %v2724_v63  ;;  %2926 = vmatmul.mubr.msk.f32.gmra.mxu0 %vm350_vm3, %v627_v0 }
 0x11d   : > { %2937 = vmatmul.mubr.msk.f32.gmra.mxu1 %vm350_vm3, %v380_v56  ;;  %2928 = vmatprep.mubr.msk.f32.mxu0 %vm350_vm3, %v628_v1 }
 0x11e   : > { %2939 = vmatprep.mubr.msk.f32.mxu1 %vm350_vm3, %v381_v58 }
 0x120   : > { %2929 = vmatmul.mubr.msk.f32.gmra.mxu0 %vm350_vm3, %v629_v2 }
 0x121   : > { %2940 = vmatmul.mubr.msk.f32.gmra.mxu1 %vm350_vm3, %v760_v3  ;;  %2944 = vmatprep.mubr.msk.f32.mxu0 %vm350_vm3, %v384_v45 }
 0x122   : > { %2955 = vmatprep.mubr.msk.f32.mxu1 %vm350_vm3, %v625_v60 }
 0x124   : > { %2945 = vmatmul.mubr.msk.f32.vlgmr.msra.gmra.mxu0 %vm350_vm3, %v3289_v47 }
 0x125   : > { %2956 = vmatmul.mubr.msk.f32.vlgmr.msra.gmra.mxu1 %vm350_vm3, %v626_v61  ;;  %2965 = vmatpush3.msk.msra.mxu0 %vm409_vm2, %v2716_v62 }
 0x126   : > { %2947 = vmatprep.mubr.msk.f32.mxu0 %vm350_vm3, %v386_v53  ;;  %2958 = vmatprep.mubr.msk.f32.mxu1 %vm350_vm3, %v627_v0 }
 0x127   : > { %2976 = vmatpush3.msk.msra.mxu1 %vm409_vm2, %v2724_v63  ;;  %2986 = vmatprep.subr.msk.mxu0 %vm409_vm2, %v2732_v4 }
 0x128   : > { %2948 = vmatmul.mubr.msk.f32.gmra.mxu0 %vm350_vm3, %v387_v55 }
 0x129   : > { %2959 = vmatmul.mubr.msk.f32.gmra.mxu1 %vm350_vm3, %v628_v1  ;;  %2950 = vmatprep.mubr.msk.f32.mxu0 %vm350_vm3, %v388_v57 }
 0x12a   : > { %2961 = vmatprep.mubr.msk.f32.mxu1 %vm350_vm3, %v629_v2 }
 0x12c   : > { %2951 = vmatmul.mubr.msk.f32.gmra.mxu0 %vm350_vm3, %v890_v5 }
 0x12d   : > { %2962 = vmatmul.mubr.msk.f32.gmra.mxu1 %vm350_vm3, %v1020_v6  ;;  %2966 = vmatprep.mubr.msk.f32.mxu0 %vm350_vm3, %v3295_v48 }
 0x12e   : > { %2977 = vmatprep.mubr.msk.f32.mxu1 %vm350_vm3, %v3289_v47 }
 0x130   : > { %2967 = vmatmul.mubr.msk.f32.vlgmr.msra.gmra.mxu0 %vm350_vm3, %v379_v54 }
 0x131   : > { %2978 = vmatmul.mubr.msk.f32.vlgmr.msra.gmra.mxu1 %vm350_vm3, %v386_v53  ;;  %2987 = vmatpush3.msk.msra.mxu0 %vm409_vm2, %v2732_v4 }
 0x132   : > { %2969 = vmatprep.mubr.msk.f32.mxu0 %vm350_vm3, %v380_v56  ;;  %2980 = vmatprep.mubr.msk.f32.mxu1 %vm350_vm3, %v387_v55 }
 0x134   : > { %2970 = vmatmul.mubr.msk.f32.gmra.mxu0 %vm350_vm3, %v381_v58 }
 0x135   : > { %2981 = vmatmul.mubr.msk.f32.gmra.mxu1 %vm350_vm3, %v388_v57  ;;  %2972 = vmatprep.mubr.msk.f32.mxu0 %vm350_vm3, %v760_v3 }
 0x136   : > { %2983 = vmatprep.mubr.msk.f32.mxu1 %vm350_vm3, %v890_v5 }
 0x138   : > { %2973 = vmatmul.mubr.msk.f32.gmra.mxu0 %vm350_vm3, %v1151_v7 }
 0x139   : > { %2984 = vmatmul.mubr.msk.f32.gmra.mxu1 %vm350_vm3, %v1281_v8  ;;  %2988 = vmatprep.mubr.msk.f32.mxu0 %vm350_vm3, %v626_v61 }
 0x13c   : > { %2989 = vmatmul.mubr.msk.f32.vlgmr.msra.gmra.mxu0 %vm350_vm3, %v627_v0 }
 0x13d   : > { %2991 = vmatprep.mubr.msk.f32.mxu0 %vm350_vm3, %v628_v1 }
 0x140   : > { %2992 = vmatmul.mubr.msk.f32.gmra.mxu0 %vm350_vm3, %v629_v2 }
 0x141   : > { %2994 = vmatprep.mubr.msk.f32.mxu0 %vm350_vm3, %v1020_v6 }
 0x144   : > { %2995 = vmatmul.mubr.msk.f32.gmra.mxu0 %vm350_vm3, %v1411_v9 }
 0x1cc   : > { %v2902_v10 = vpop.f32.mrf.mxu0 }
 0x1cd   : > { %v2913_v11 = vpop.f32.mrf.mxu1 }
 0x1ce   : > { %v479_v12 = vpop.f32.mrf.mxu0  ;;  %v601_v40 = vadd.f32 %v2913_v11, %v2902_v10 }
 0x1cf   : > { %v595_v13 = vpop.f32.mrf.mxu1 }
 0x1d0   : > { %v2905_v14 = vpop.f32.mrf.mxu0  ;;  %v596_v43 = vadd.f32 %v595_v13, %v479_v12 }
 0x1d1   : > { %v2916_v15 = vpop.f32.mrf.mxu1 }
 0x1d2   : > { %v489_v16 = vpop.f32.mrf.mxu0  ;;  %v611_v47 = vadd.f32 %v2916_v15, %v2905_v14 }
 0x1d3   : > { %v605_v17 = vpop.f32.mrf.mxu1 }
 0x1d4   : > { %v2908_v18 = vpop.f32.mrf.mxu0  ;;  %v606_v49 = vadd.f32 %v605_v17, %v489_v16 }
 0x1d5   : > { %v2919_v19 = vpop.f32.mrf.mxu1 }
 0x1d6   : > { %v499_v20 = vpop.f32.mrf.mxu0  ;;  %v621_v57 = vadd.f32 %v2919_v19, %v2908_v18 }
 0x1d7   : > { %v615_v21 = vpop.f32.mrf.mxu1 }
 0x1d8   : > { %v2924_v22 = vpop.f32.mrf.mxu0  ;;  %v616_v60 = vadd.f32 %v615_v21, %v499_v20 }
 0x1d9   : > { %v2935_v23 = vpop.f32.mrf.mxu1  ;;  %v749_v44 = vadd.f32 %v2924_v22, %v601_v40 }
 0x1da   : > { %v719_v24 = vpop.f32.mrf.mxu0 }
 0x1db   : > { %v850_v25 = vpop.f32.mrf.mxu1  ;;  %v748_v48 = vadd.f32 %v719_v24, %v596_v43  ;;  %v880_v52 = vadd.f32 %v2935_v23, %v749_v44 }
 0x1dc   : > { %v2927_v26 = vpop.f32.mrf.mxu0 }
 0x1dd   : > { %v2938_v27 = vpop.f32.mrf.mxu1  ;;  %v751_v53 = vadd.f32 %v2927_v26, %v611_v47  ;;  %v879_v58 = vadd.f32 %v850_v25, %v748_v48  ;;  %v2740_v26 = vld [vmem:[%s3490_s2] ss:$0 sm:$0xff] }
 0x1de   : > { %v729_v28 = vpop.f32.mrf.mxu0 }
 0x1df   : > { %v860_v29 = vpop.f32.mrf.mxu1  ;;  %v750_v54 = vadd.f32 %v729_v28, %v606_v49  ;;  %v882_v62 = vadd.f32 %v2938_v27, %v751_v53 }
 0x1e0   : > { %v2930_v30 = vpop.f32.mrf.mxu0 }
 0x1e1   : > { %v2941_v31 = vpop.f32.mrf.mxu1  ;;  %v753_v63 = vadd.f32 %v2930_v30, %v621_v57  ;;  %v881_v1 = vadd.f32 %v860_v29, %v750_v54 }
 0x1e2   : > { %v739_v32 = vpop.f32.mrf.mxu0 }
 0x1e3   : > { %v870_v33 = vpop.f32.mrf.mxu1  ;;  %v752_v2 = vadd.f32 %v739_v32, %v616_v60  ;;  %v884_v9 = vadd.f32 %v2941_v31, %v753_v63 }
 0x1e4   : > { %v2946_v34 = vpop.f32.mrf.mxu0 }
 0x1e5   : > { %v2957_v35 = vpop.f32.mrf.mxu1  ;;  %v1010_v59 = vadd.f32 %v2946_v34, %v880_v52  ;;  %v883_v12 = vadd.f32 %v870_v33, %v752_v2 }
 0x1e6   : > { %v980_v36 = vpop.f32.mrf.mxu0 }
 0x1e7   : > { %v1110_v37 = vpop.f32.mrf.mxu1  ;;  %v1009_v0 = vadd.f32 %v980_v36, %v879_v58  ;;  %v1140_v5 = vadd.f32 %v2957_v35, %v1010_v59 }
 0x1e8   : > { %v2949_v38 = vpop.f32.mrf.mxu0 }
 0x1e9   : > { %v2960_v39 = vpop.f32.mrf.mxu1  ;;  %v1012_v6 = vadd.f32 %v2949_v38, %v882_v62  ;;  %v1139_v10 = vadd.f32 %v1110_v37, %v1009_v0 }
 0x1ea   : > { %v990_v41 = vpop.f32.mrf.mxu0 }
 0x1eb   : > { %v1120_v42 = vpop.f32.mrf.mxu1  ;;  %v1011_v7 = vadd.f32 %v990_v41, %v881_v1  ;;  %v1142_v15 = vadd.f32 %v2960_v39, %v1012_v6 }
 0x1ec   : > { %v2952_v45 = vpop.f32.mrf.mxu0 }
 0x1ed   : > { %v2963_v46 = vpop.f32.mrf.mxu1  ;;  %v1014_v16 = vadd.f32 %v2952_v45, %v884_v9  ;;  %v1141_v18 = vadd.f32 %v1120_v42, %v1011_v7 }
 0x1ee   : > { %v1000_v50 = vpop.f32.mrf.mxu0 }
 0x1ef   : > { %v1130_v51 = vpop.f32.mrf.mxu1  ;;  %v1013_v19 = vadd.f32 %v1000_v50, %v883_v12  ;;  %v1144_v27 = vadd.f32 %v2963_v46, %v1014_v16 }
 0x1f0   : > { %v2968_v55 = vpop.f32.mrf.mxu0 }
 0x1f1   : > { %v2979_v56 = vpop.f32.mrf.mxu1  ;;  %v1271_v11 = vadd.f32 %v2968_v55, %v1140_v5  ;;  %v1143_v30 = vadd.f32 %v1130_v51, %v1013_v19 }
 0x1f2   : > { %v1241_v61 = vpop.f32.mrf.mxu0 }
 0x1f3   : > { %v1371_v3 = vpop.f32.mrf.mxu1  ;;  %v1270_v17 = vadd.f32 %v1241_v61, %v1139_v10  ;;  %v1401_v21 = vadd.f32 %v2979_v56, %v1271_v11 }
 0x1f4   : > { %v2971_v4 = vpop.f32.mrf.mxu0 }
 0x1f5   : > { %v2982_v13 = vpop.f32.mrf.mxu1  ;;  %v1273_v22 = vadd.f32 %v2971_v4, %v1142_v15  ;;  %v1400_v28 = vadd.f32 %v1371_v3, %v1270_v17 }
 0x1f6   : > { %v1251_v8 = vpop.f32.mrf.mxu0 }
 0x1f7   : > { %v1272_v23 = vadd.f32 %v1251_v8, %v1141_v18  ;;  %v1381_v24 = vpop.f32.mrf.mxu1  ;;  %v1403_v32 = vadd.f32 %v2982_v13, %v1273_v22 }
 0x1f8   : > { %v2974_v14 = vpop.f32.mrf.mxu0 }
 0x1f9   : > { %v1275_v33 = vadd.f32 %v2974_v14, %v1144_v27  ;;  %v1402_v36 = vadd.f32 %v1381_v24, %v1272_v23  ;;  %v2985_v37 = vpop.f32.mrf.mxu1 }
 0x1fa   : > { %v1261_v20 = vpop.f32.mrf.mxu0 }
 0x1fb   : > { %v1274_v39 = vadd.f32 %v1261_v20, %v1143_v30  ;;  %v1405_v44 = vadd.f32 %v2985_v37, %v1275_v33  ;;  %v1391_v48 = vpop.f32.mrf.mxu1 }
 0x1fc   : > { %v2990_v25 = vpop.f32.mrf.mxu0 }
 0x1fd   : > { %v1531_v29 = vadd.f32 %v2990_v25, %v1401_v21  ;;  %v1404_v50 = vadd.f32 %v1391_v48, %v1274_v39 }
 0x1fe   : > { %v1501_v31 = vpop.f32.mrf.mxu0 }
 0x1ff   : > { %v1544_v34 = vadd.f32 %v2740_v26, %v1531_v29  ;;  %v1530_v35 = vadd.f32 %v1501_v31, %v1400_v28 }
 0x200   : > { %v2993_v38 = vpop.f32.mrf.mxu0 }
 0x201   : > { %v1550_v40 = vmax.f32 %v1544_v34, 0.0  ;;  %v1543_v41 = vadd.f32 %v2740_v26, %v1530_v35  ;;  %v1533_v42 = vadd.f32 %v2993_v38, %v1403_v32 }
 0x202   : > { %v1511_v43 = vpop.f32.mrf.mxu0 }
 0x203   : > { %1557 = vst.msk [vmem:[#allocation3 + $0x11] sm:$0xff] %vm1555_vm4, %v1550_v40  ;;  %v1549_v45 = vmax.f32 %v1543_v41, 0.0  ;;  %v1546_v46 = vadd.f32 %v2740_v26, %v1533_v42  ;;  %v1532_v47 = vadd.f32 %v1511_v43, %v1402_v36 }
 0x204   : > { %v2996_v49 = vpop.f32.mrf.mxu0 }
 0x205   : > { %1556 = vst.msk [vmem:[#allocation3 + $0x1] sm:$0xff] %vm1555_vm4, %v1549_v45  ;;  %v1552_v51 = vmax.f32 %v1546_v46, 0.0  ;;  %v1545_v52 = vadd.f32 %v2740_v26, %v1532_v47  ;;  %v1535_v53 = vadd.f32 %v2996_v49, %v1405_v44 }
 0x206   : > { %v1521_v54 = vpop.f32.mrf.mxu0 }
 0x207   : > { %1559 = vst.msk [vmem:[#allocation3 + $0x31] sm:$0xff] %vm1555_vm4, %v1552_v51  ;;  %v1551_v55 = vmax.f32 %v1545_v52, 0.0  ;;  %v1548_v56 = vadd.f32 %v2740_v26, %v1535_v53  ;;  %v1534_v57 = vadd.f32 %v1521_v54, %v1404_v50 }
 0x209   : > { %1558 = vst.msk [vmem:[#allocation3 + $0x21] sm:$0xff] %vm1555_vm4, %v1551_v55  ;;  %v1554_v58 = vmax.f32 %v1548_v56, 0.0  ;;  %v1547_v59 = vadd.f32 %v2740_v26, %v1534_v57  ;;  %1578 = sbr.rel (%p2741_p8) target bundleno = 529 (0x211), region = 44 }
 0x20b   : > { %1561 = vst.msk [vmem:[#allocation3 + $0x51] sm:$0xff] %vm1555_vm4, %v1554_v58  ;;  %v1553_v60 = vmax.f32 %v1547_v59, 0.0 }
 0x20d   : > { %1560 = vst.msk [vmem:[#allocation3 + $0x41] sm:$0xff] %vm1555_vm4, %v1553_v60 }
 0x20e   : > { %vm1580_vm5 = vcmask 58368   ;;  %v3157_v61 = vmov 0.0  }
 0x20f   : > { %1579 = vst.msk [vmem:[#allocation3] sm:$0xff] %vm1555_vm4, %v3157_v61 }
 0x210   : > { %1581 = vst.msk [vmem:[#allocation3 + $0x8] sm:$0x3] %vm1580_vm5, %v3157_v61 }
 0x211 PF: > { %p2742_p9 = scmp.ne.s32.totalorder %s3136_s18, 1 }
 0x213   : > { %1585 = sbr.rel (%p2742_p9) target bundleno = 539 (0x21b), region = 48 }
 0x218   : > { %vm1588_vm6 = vcmask 58368   ;;  %v3158_v62 = vmov 0.0  }
 0x219   : > { %1587 = vst.msk [vmem:[#allocation3 + $0x50] sm:$0xff] %vm1555_vm4, %v3158_v62 }
 0x21a   : > { %1589 = vst.msk [vmem:[#allocation3 + $0x58] sm:$0x3] %vm1588_vm6, %v3158_v62 }
 0x21b PF: > { %v2743_v63 = vld [vmem:[%s3491_s3 + $0x8] sm:$0xff]  ;;  %v1596_v1 = vld [vmem:[#allocation3 + $0x11] sm:$0xff]  ;;  %v1594_v2 = vld [vmem:[%s3491_s3] sm:$0xff] }
 0x21c   : > { %v1595_v0 = vld [vmem:[#allocation3 + $0x1] sm:$0xff]  ;;  %2997 = vmatprep.subr.mxu1 %v2743_v63  ;;  %v2752_v4 = vld [vmem:[%s3491_s3 + $0x10] sm:$0xff]  ;;  %v2757_v6 = vld [vmem:[%s3491_s3 + $0x18] sm:$0xff] }
 0x21d   : > { %2999 = vmatprep.mubr.msk.f32.mxu1 %vm1555_vm4, %v1595_v0  ;;  %v3401_v3 = vld [vmem:[#allocation3 + $0x21] sm:$0xff]  ;;  %2998 = vmatpush3.msra.mxu1 %v2743_v63  ;;  %v1598_v7 = vld [vmem:[#allocation3 + $0x31] sm:$0xff] }
 0x21e   : > { %3000 = vmatmul.mubr.msk.f32.vlgmr.msra.gmra.mxu1 %vm1555_vm4, %v1596_v1  ;;  %3005 = vmatprep.subr.mxu1 %v1594_v2  ;;  %v1795_v5 = vld [vmem:[#allocation3 + $0x2] sm:$0xff]  ;;  %v1796_v8 = vld [vmem:[#allocation3 + $0x12] sm:$0xff] }
 0x21f   : > { %3006 = vmatpush3.msra.mxu1 %v1594_v2  ;;  %3002 = vmatprep.mubr.msk.f32.mxu1 %vm1555_vm4, %v3401_v3  ;;  %v1590_v9 = vld [vmem:[#allocation3] sm:$0xff]  ;;  %v2772_v12 = vld [vmem:[%s3491_s3 + $0x30] sm:$0xff]  ;;  %v2767_v16 = vld [vmem:[%s3491_s3 + $0x28] sm:$0xff] }
 0x220   : > { %3013 = vmatprep.subr.mxu0 %v2752_v4  ;;  %3015 = vmatprep.mubr.msk.f32.mxu0 %vm1555_vm4, %v1795_v5  ;;  %v2762_v10 = vld [vmem:[%s3491_s3 + $0x20] sm:$0xff]  ;;  %v1591_v13 = vld [vmem:[#allocation3 + $0x10] sm:$0xff]  ;;  %v2777_v20 = vld [vmem:[%s3491_s3 + $0x38] sm:$0xff] }
 0x221   : > { %3014 = vmatpush3.msra.mxu0 %v2752_v4  ;;  %3021 = vmatprep.subr.mxu1 %v2757_v6  ;;  %v1797_v11 = vld [vmem:[#allocation3 + $0x22] sm:$0xff]  ;;  %v1798_v14 = vld [vmem:[#allocation3 + $0x32] sm:$0xff] }
 0x222   : > { %3003 = vmatmul.mubr.msk.f32.gmra.mxu1 %vm1555_vm4, %v1598_v7  ;;  %3016 = vmatmul.mubr.msk.f32.vlgmr.msra.gmra.mxu0 %vm1555_vm4, %v1796_v8  ;;  %v1592_v15 = vld [vmem:[#allocation3 + $0x20] sm:$0xff]  ;;  %v1593_v17 = vld [vmem:[#allocation3 + $0x30] sm:$0xff] }
 0x223   : > { %3007 = vmatprep.mubr.msk.f32.mxu1 %vm1555_vm4, %v1590_v9  ;;  %3029 = vmatprep.subr.mxu0 %v2762_v10  ;;  %v2782_v18 = vld [vmem:[%s3491_s3 + $0x40] sm:$0xff]  ;;  %v2228_v22 = vld [vmem:[#allocation3 + $0x50] sm:$0xff] }
 0x224   : > { %3030 = vmatpush3.msra.mxu0 %v2762_v10  ;;  %3018 = vmatprep.mubr.msk.f32.mxu0 %vm1555_vm4, %v1797_v11  ;;  %v2013_v19 = vld [vmem:[#allocation3 + $0x41] sm:$0xff]  ;;  %v2442_v24 = vld [vmem:[#allocation3 + $0x52] sm:$0xff] }
 0x225   : > { %3045 = vmatprep.subr.mxu0 %v2772_v12  ;;  %v1906_v21 = vld [vmem:[#allocation3 + $0x40] sm:$0xff]  ;;  %v2335_v25 = vld [vmem:[#allocation3 + $0x51] sm:$0xff] }
 0x226   : > { %3008 = vmatmul.mubr.msk.f32.vlgmr.msra.gmra.mxu1 %vm1555_vm4, %v1591_v13  ;;  %3019 = vmatmul.mubr.msk.f32.gmra.mxu0 %vm1555_vm4, %v1798_v14  ;;  %v2120_v23 = vld [vmem:[#allocation3 + $0x42] sm:$0xff] }
 0x227   : > { %3022 = vmatpush3.msra.mxu1 %v2757_v6  ;;  %3010 = vmatprep.mubr.msk.f32.mxu1 %vm1555_vm4, %v1592_v15 }
 0x228   : > { %3031 = vmatprep.mubr.msk.f32.mxu0 %vm1555_vm4, %v1596_v1  ;;  %3037 = vmatprep.subr.mxu1 %v2767_v16 }
 0x22a   : > { %3011 = vmatmul.mubr.msk.f32.gmra.mxu1 %vm1555_vm4, %v1593_v17  ;;  %3032 = vmatmul.mubr.msk.f32.vlgmr.msra.gmra.mxu0 %vm1555_vm4, %v3401_v3 }
 0x22b   : > { %3023 = vmatprep.mubr.msk.f32.mxu1 %vm1555_vm4, %v1591_v13  ;;  %3046 = vmatpush3.msra.mxu0 %v2772_v12 }
 0x22c   : > { %3034 = vmatprep.mubr.msk.f32.mxu0 %vm1555_vm4, %v1598_v7  ;;  %3061 = vmatprep.subr.mxu0 %v2782_v18 }
 0x22e   : > { %3024 = vmatmul.mubr.msk.f32.vlgmr.msra.gmra.mxu1 %vm1555_vm4, %v1592_v15  ;;  %3035 = vmatmul.mubr.msk.f32.gmra.mxu0 %vm1555_vm4, %v2013_v19 }
 0x22f   : > { %3038 = vmatpush3.msra.mxu1 %v2767_v16  ;;  %3026 = vmatprep.mubr.msk.f32.mxu1 %vm1555_vm4, %v1593_v17  ;;  %v2787_v16 = vld [vmem:[%s3492_s4] ss:$0 sm:$0xff] }
 0x230   : > { %3047 = vmatprep.mubr.msk.f32.mxu0 %vm1555_vm4, %v1592_v15  ;;  %3053 = vmatprep.subr.mxu1 %v2777_v20 }
 0x232   : > { %3027 = vmatmul.mubr.msk.f32.gmra.mxu1 %vm1555_vm4, %v1906_v21  ;;  %3048 = vmatmul.mubr.msk.f32.vlgmr.msra.gmra.mxu0 %vm1555_vm4, %v1593_v17 }
 0x233   : > { %3039 = vmatprep.mubr.msk.f32.mxu1 %vm1555_vm4, %v1796_v8  ;;  %3062 = vmatpush3.msra.mxu0 %v2782_v18 }
 0x234   : > { %3050 = vmatprep.mubr.msk.f32.mxu0 %vm1555_vm4, %v1906_v21 }
 0x236   : > { %3040 = vmatmul.mubr.msk.f32.vlgmr.msra.gmra.mxu1 %vm1555_vm4, %v1797_v11  ;;  %3051 = vmatmul.mubr.msk.f32.gmra.mxu0 %vm1555_vm4, %v2228_v22 }
 0x237   : > { %3054 = vmatpush3.msra.mxu1 %v2777_v20  ;;  %3042 = vmatprep.mubr.msk.f32.mxu1 %vm1555_vm4, %v1798_v14 }
 0x238   : > { %3063 = vmatprep.mubr.msk.f32.mxu0 %vm1555_vm4, %v1797_v11 }
 0x23a   : > { %3043 = vmatmul.mubr.msk.f32.gmra.mxu1 %vm1555_vm4, %v2120_v23  ;;  %3064 = vmatmul.mubr.msk.f32.vlgmr.msra.gmra.mxu0 %vm1555_vm4, %v1798_v14 }
 0x23b   : > { %3055 = vmatprep.mubr.msk.f32.mxu1 %vm1555_vm4, %v3401_v3  ;;  %3066 = vmatprep.mubr.msk.f32.mxu0 %vm1555_vm4, %v2120_v23 }
 0x23e   : > { %3056 = vmatmul.mubr.msk.f32.vlgmr.msra.gmra.mxu1 %vm1555_vm4, %v1598_v7  ;;  %3067 = vmatmul.mubr.msk.f32.gmra.mxu0 %vm1555_vm4, %v2442_v24 }
 0x23f   : > { %3058 = vmatprep.mubr.msk.f32.mxu1 %vm1555_vm4, %v2013_v19 }
 0x242   : > { %3059 = vmatmul.mubr.msk.f32.gmra.mxu1 %vm1555_vm4, %v2335_v25 }
 0x2de   : > { %v3001_v26 = vpop.f32.mrf.mxu1 }
 0x2e0   : > { %v1679_v27 = vpop.f32.mrf.mxu1 }
 0x2e2   : > { %v3004_v28 = vpop.f32.mrf.mxu1  ;;  %v3017_v29 = vpop.f32.mrf.mxu0 }
 0x2e4   : > { %v1689_v30 = vpop.f32.mrf.mxu1  ;;  %v1879_v31 = vpop.f32.mrf.mxu0 }
 0x2e6   : > { %v3009_v32 = vpop.f32.mrf.mxu1  ;;  %v3020_v33 = vpop.f32.mrf.mxu0 }
 0x2e7   : > { %v1782_v40 = vadd.f32 %v3009_v32, %v3001_v26 }
 0x2e8   : > { %v1776_v34 = vpop.f32.mrf.mxu1  ;;  %v1889_v35 = vpop.f32.mrf.mxu0 }
 0x2e9   : > { %v1777_v43 = vadd.f32 %v1776_v34, %v1679_v27  ;;  %v1899_v46 = vadd.f32 %v3017_v29, %v1782_v40 }
 0x2ea   : > { %v3012_v36 = vpop.f32.mrf.mxu1  ;;  %v3033_v37 = vpop.f32.mrf.mxu0 }
 0x2eb   : > { %v1792_v47 = vadd.f32 %v3012_v36, %v3004_v28  ;;  %v1898_v50 = vadd.f32 %v1879_v31, %v1777_v43 }
 0x2ec   : > { %v1786_v38 = vpop.f32.mrf.mxu1  ;;  %v2094_v39 = vpop.f32.mrf.mxu0 }
 0x2ed   : > { %v1787_v51 = vadd.f32 %v1786_v38, %v1689_v30  ;;  %v1901_v55 = vadd.f32 %v3020_v33, %v1792_v47 }
 0x2ee   : > { %v3025_v41 = vpop.f32.mrf.mxu1  ;;  %v3036_v42 = vpop.f32.mrf.mxu0 }
 0x2ef   : > { %v2007_v52 = vadd.f32 %v3025_v41, %v1899_v46  ;;  %v1900_v59 = vadd.f32 %v1889_v35, %v1787_v51 }
 0x2f0   : > { %v1987_v44 = vpop.f32.mrf.mxu1  ;;  %v2104_v45 = vpop.f32.mrf.mxu0 }
 0x2f1   : > { %v2006_v56 = vadd.f32 %v1987_v44, %v1898_v50  ;;  %v2114_v60 = vadd.f32 %v3033_v37, %v2007_v52 }
 0x2f2   : > { %v3028_v48 = vpop.f32.mrf.mxu1  ;;  %v3049_v49 = vpop.f32.mrf.mxu0 }
 0x2f3   : > { %v2009_v61 = vadd.f32 %v3028_v48, %v1901_v55  ;;  %v2113_v0 = vadd.f32 %v2094_v39, %v2006_v56 }
 0x2f4   : > { %v1997_v53 = vpop.f32.mrf.mxu1  ;;  %v2309_v54 = vpop.f32.mrf.mxu0 }
 0x2f5   : > { %v2008_v1 = vadd.f32 %v1997_v53, %v1900_v59  ;;  %v2116_v5 = vadd.f32 %v3036_v42, %v2009_v61 }
 0x2f6   : > { %v3041_v57 = vpop.f32.mrf.mxu1  ;;  %v3052_v58 = vpop.f32.mrf.mxu0 }
 0x2f7   : > { %v2221_v2 = vadd.f32 %v3041_v57, %v2114_v60  ;;  %v2115_v8 = vadd.f32 %v2104_v45, %v2008_v1 }
 0x2f8   : > { %v2201_v62 = vpop.f32.mrf.mxu1  ;;  %v2319_v63 = vpop.f32.mrf.mxu0 }
 0x2f9   : > { %v2220_v6 = vadd.f32 %v2201_v62, %v2113_v0  ;;  %v2329_v9 = vadd.f32 %v3049_v49, %v2221_v2 }
 0x2fa   : > { %v3044_v3 = vpop.f32.mrf.mxu1  ;;  %v3065_v4 = vpop.f32.mrf.mxu0 }
 0x2fb   : > { %v2223_v10 = vadd.f32 %v3044_v3, %v2116_v5  ;;  %v2328_v13 = vadd.f32 %v2309_v54, %v2220_v6 }
 0x2fc   : > { %v2211_v7 = vpop.f32.mrf.mxu1  ;;  %v2523_v12 = vpop.f32.mrf.mxu0 }
 0x2fd   : > { %v2222_v14 = vadd.f32 %v2211_v7, %v2115_v8  ;;  %v2331_v18 = vadd.f32 %v3052_v58, %v2223_v10 }
 0x2fe   : > { %v3057_v11 = vpop.f32.mrf.mxu1  ;;  %v3068_v22 = vpop.f32.mrf.mxu0 }
 0x2ff   : > { %v2436_v15 = vadd.f32 %v3057_v11, %v2329_v9  ;;  %v2330_v23 = vadd.f32 %v2319_v63, %v2222_v14 }
 0x300   : > { %v2416_v17 = vpop.f32.mrf.mxu1  ;;  %v2533_v32 = vpop.f32.mrf.mxu0 }
 0x301   : > { %v2543_v19 = vadd.f32 %v3065_v4, %v2436_v15  ;;  %v2435_v20 = vadd.f32 %v2416_v17, %v2328_v13 }
 0x302   : > { %v3060_v21 = vpop.f32.mrf.mxu1 }
 0x303   : > { %v2554_v24 = vadd.f32 %v2787_v16, %v2543_v19  ;;  %v2542_v25 = vadd.f32 %v2523_v12, %v2435_v20  ;;  %v2438_v26 = vadd.f32 %v3060_v21, %v2331_v18 }
 0x304   : > { %v2426_v27 = vpop.f32.mrf.mxu1 }
 0x305   : > { %v2558_v28 = vmax.f32 %v2554_v24, 0.0  ;;  %v2553_v29 = vadd.f32 %v2787_v16, %v2542_v25  ;;  %v2545_v30 = vadd.f32 %v3068_v22, %v2438_v26  ;;  %v2437_v31 = vadd.f32 %v2426_v27, %v2330_v23 }
 0x307   : > { %2562 = vst.msk [vmem:[%s3232_s15 + $0x8] sm:$0xff] %vm1555_vm4, %v2558_v28  ;;  %v2557_v33 = vmax.f32 %v2553_v29, 0.0  ;;  %v2556_v34 = vadd.f32 %v2787_v16, %v2545_v30  ;;  %v2544_v35 = vadd.f32 %v2533_v32, %v2437_v31 }
 0x309   : > { %2561 = vst.msk [vmem:[%s3232_s15] sm:$0xff] %vm1555_vm4, %v2557_v33  ;;  %v2560_v36 = vmax.f32 %v2556_v34, 0.0  ;;  %v2555_v37 = vadd.f32 %v2787_v16, %v2544_v35 }
 0x30b   : > { %2564 = vst.msk [vmem:[%s3232_s15 + $0x18] sm:$0xff] %vm1555_vm4, %v2560_v36  ;;  %v2559_v38 = vmax.f32 %v2555_v37, 0.0 }
 0x30d   : > { %2563 = vst.msk [vmem:[%s3232_s15 + $0x10] sm:$0xff] %vm1555_vm4, %v2559_v38 }
 0x30e PF: > { %s15_s22 = sadd.s32 1, %s3152_s22   ;;  %s3494_s18 = smov %s3144_s20 }
 0x30f   : > { %p12_p10 = scmp.ge.s32.totalorder %s15_s22, 6   ;;  %s3495_s19 = smov %s3148_s21 }
 0x310   : > { %s3496_s20 = smov %s3499_s23  ;;  %s3497_s21 = smov %s3503_s24 }
 0x311   :  { %14 = sbr.rel (!%p12_p10) target bundleno = 3 (0x3), region = 99 }

</bundles_post_ra>
